<compile_context>
chip_gen: v7x
topology: tpu7x:2x2x1
jax: 0.10.0
libtpu: 0.0.40
codegen_flags: <defaults>
</compile_context>

<pallas_src>
import math

import jax
import jax.numpy as jnp
from jax.experimental import pallas as pl
from jax.experimental.pallas import tpu as pltpu

# true (torch) dims
CODE_SIZE = 20
IN_DIM = 784
HID = 400

# lane-padded dims (multiples of 128)
IN_PAD = 896    # 7 * 128
HID_PAD = 512   # 4 * 128
CODE_PAD = 128  # 1 * 128


def _round_up(x, m):
    return (x + m - 1) // m * m


def _rvae_kernel(x_ref, w1_ref, b1_ref, w21_ref, b21_ref,
                 w3_ref, b3_ref, w4_ref, b4_ref,
                 recon_ref, mu_ref):
    # encode: h1 = relu(x @ W1 + b1); mu = h1 @ W21 + b21
    x = x_ref[...]                                                     # (TB, IN_PAD) bf16
    h1 = jnp.dot(x, w1_ref[...], preferred_element_type=jnp.float32) + b1_ref[...]
    h1 = jnp.maximum(h1, 0.0).astype(jnp.bfloat16)                     # f32 VPU, bf16 for MXU
    mu = jnp.dot(h1, w21_ref[...], preferred_element_type=jnp.float32) + b21_ref[...]
    mu_ref[...] = mu                                                   # lane-dense 128-wide store

    # decode: h3 = relu(mu @ W3 + b3); recon = sigmoid(h3 @ W4 + b4)
    h3 = jnp.dot(mu.astype(jnp.bfloat16), w3_ref[...],
                 preferred_element_type=jnp.float32) + b3_ref[...]
    h3 = jnp.maximum(h3, 0.0).astype(jnp.bfloat16)
    logits = jnp.dot(h3, w4_ref[...], preferred_element_type=jnp.float32) + b4_ref[...]
    recon_ref[...] = jax.nn.sigmoid(logits)                            # f32 elementwise (v5e-safe)


def _pad2(a, rows, cols, dtype):
    """Zero-pad a 2D array to (rows, cols) and cast."""
    out = jnp.zeros((rows, cols), dtype)
    return out.at[:a.shape[0], :a.shape[1]].set(a.astype(dtype))


def rvae_forward(x_img, params, *, tb=256):
    """x_img: (N, C, H, W) with C*H*W == 784. Returns (recon (N,784), mu (N,20))."""
    B = x_img.shape[0]
    x = x_img.reshape(B, -1).astype(jnp.float32)
    assert x.shape[1] == IN_DIM

    # batch tile: multiple of 16 (bf16 sublane packing), capped at `tb`
    TB = min(tb, _round_up(B, 16))
    B_pad = _round_up(B, TB)

    # pad batch + feature lanes, cast matmul inputs to bf16
    xp = jnp.zeros((B_pad, IN_PAD), jnp.bfloat16).at[:B, :IN_DIM].set(
        x.astype(jnp.bfloat16))

    w1, b1, w21, b21, w3, b3, w4, b4 = params
    w1p = _pad2(w1, IN_PAD, HID_PAD, jnp.bfloat16)
    b1p = _pad2(b1, 1, HID_PAD, jnp.float32)
    w21p = _pad2(w21, HID_PAD, CODE_PAD, jnp.bfloat16)
    b21p = _pad2(b21, 1, CODE_PAD, jnp.float32)
    w3p = _pad2(w3, CODE_PAD, HID_PAD, jnp.bfloat16)
    b3p = _pad2(b3, 1, HID_PAD, jnp.float32)
    w4p = _pad2(w4, HID_PAD, IN_PAD, jnp.bfloat16)
    b4p = _pad2(b4, 1, IN_PAD, jnp.float32)

    def resident(shape):
        # whole array in one block, same block index every grid step -> fetched once
        return pl.BlockSpec(shape, lambda i: (0,) * len(shape))

    mm_elems = (IN_PAD * HID_PAD + HID_PAD * CODE_PAD
                + CODE_PAD * HID_PAD + HID_PAD * IN_PAD)
    cost = pl.CostEstimate(
        flops=2 * B_pad * mm_elems,
        transcendentals=B_pad * IN_PAD,                       # sigmoid
        bytes_accessed=(2 * mm_elems                          # bf16 weights
                        + 2 * B_pad * IN_PAD                  # bf16 input
                        + 4 * B_pad * (IN_PAD + CODE_PAD)),   # f32 outputs
    )

    recon_p, mu_p = pl.pallas_call(
        _rvae_kernel,
        out_shape=(
            jax.ShapeDtypeStruct((B_pad, IN_PAD), jnp.float32),
            jax.ShapeDtypeStruct((B_pad, CODE_PAD), jnp.float32),
        ),
        grid=(B_pad // TB,),
        in_specs=[
            pl.BlockSpec((TB, IN_PAD), lambda i: (i, 0)),     # batch-tiled activations
            resident((IN_PAD, HID_PAD)), resident((1, HID_PAD)),
            resident((HID_PAD, CODE_PAD)), resident((1, CODE_PAD)),
            resident((CODE_PAD, HID_PAD)), resident((1, HID_PAD)),
            resident((HID_PAD, IN_PAD)), resident((1, IN_PAD)),
        ],
        out_specs=(
            pl.BlockSpec((TB, IN_PAD), lambda i: (i, 0)),
            pl.BlockSpec((TB, CODE_PAD), lambda i: (i, 0)),
        ),
        compiler_params=pltpu.CompilerParams(
            dimension_semantics=("parallel",),                # v7x: shard batch over both TCs
            vmem_limit_bytes=32 << 20,                        # lowered from 64 MiB (v7x headroom)
        ),
        cost_estimate=cost,
    )(xp, w1p, b1p, w21p, b21p, w3p, b3p, w4p, b4p)

    # slice padding away (recon pad lanes are sigmoid(0)=0.5 garbage, dropped here)
    return recon_p[:B, :IN_DIM], mu_p[:B, :CODE_SIZE]


def rvae_reference(x_img, params):
    """Pure-JAX f32 reference matching the PyTorch forward()."""
    B = x_img.shape[0]
    x = x_img.reshape(B, IN_DIM).astype(jnp.float32)
    w1, b1, w21, b21, w3, b3, w4, b4 = params
    h1 = jnp.maximum(x @ w1 + b1, 0.0)
    mu = h1 @ w21 + b21
    h3 = jnp.maximum(mu @ w3 + b3, 0.0)
    recon = jax.nn.sigmoid(h3 @ w4 + b4)
    return recon, mu


def init_params(key):
    """Mimics nn.Linear default init U(-1/sqrt(fan_in), 1/sqrt(fan_in)).

    Weights stored transposed vs. PyTorch: shape (in_features, out_features).
    """
    dims = [(IN_DIM, HID),       # fc1
            (HID, CODE_SIZE),    # fc21
            (CODE_SIZE, HID),    # fc3
            (HID, IN_DIM)]       # fc4
    params = []
    keys = jax.random.split(key, 2 * len(dims))
    for i, (fan_in, fan_out) in enumerate(dims):
        bound = 1.0 / math.sqrt(fan_in)
        w = jax.random.uniform(keys[2 * i], (fan_in, fan_out),
                               minval=-bound, maxval=bound, dtype=jnp.float32)
        b = jax.random.uniform(keys[2 * i + 1], (1, fan_out),
                               minval=-bound, maxval=bound, dtype=jnp.float32)
        params += [w, b]
    return tuple(params)


if __name__ == "__main__":
    key = jax.random.PRNGKey(0)
    k_x, k_p = jax.random.split(key)

    # Fashion-MNIST-shaped batch: (N=8, C=1, H=28, W=28) -> 784 features
    x = jax.random.uniform(k_x, (8, 1, 28, 28), dtype=jnp.float32)
    params = init_params(k_p)

    recon, mu = jax.jit(rvae_forward)(x, params)
    jax.block_until_ready((recon, mu))

    assert recon.shape == (8, IN_DIM) and mu.shape == (8, CODE_SIZE)
    assert bool(jnp.all((recon >= 0.0) & (recon <= 1.0)))

    # loose check vs. f32 reference (kernel matmuls use bf16 inputs)
    recon_ref, mu_ref = rvae_reference(x, params)
    assert bool(jnp.max(jnp.abs(mu - mu_ref)) < 6e-2)
    assert bool(jnp.max(jnp.abs(recon - recon_ref)) < 3e-2)

    print("KERNEL_OK")
</pallas_src>

<mosaic_0001>
module attributes {stable_mosaic.version = 11 : i64} {
  func.func @_rvae_kernel(%arg0: i32, %arg1: memref<16x896xbf16, #tpu.memory_space<vmem>>, %arg2: memref<896x512xbf16, #tpu.memory_space<vmem>>, %arg3: memref<1x512xf32, #tpu.memory_space<vmem>>, %arg4: memref<512x128xbf16, #tpu.memory_space<vmem>>, %arg5: memref<1x128xf32, #tpu.memory_space<vmem>>, %arg6: memref<128x512xbf16, #tpu.memory_space<vmem>>, %arg7: memref<1x512xf32, #tpu.memory_space<vmem>>, %arg8: memref<512x896xbf16, #tpu.memory_space<vmem>>, %arg9: memref<1x896xf32, #tpu.memory_space<vmem>>, %arg10: memref<16x896xf32, #tpu.memory_space<vmem>>, %arg11: memref<16x128xf32, #tpu.memory_space<vmem>>) attributes {dimension_semantics = [#tpu.dimension_semantics<parallel>], iteration_bounds = array<i64: 1>, scalar_prefetch = 0 : i64, scratch_operands = 0 : i64, tpu.core_type = #tpu.core_type<tc>, window_params = [{transform_indices = @transform_0, window_bounds = array<i64: 16, 896>}, {pipeline_mode = #tpu.pipeline_mode<synchronous>, transform_indices = @transform_1, window_bounds = array<i64: 896, 512>}, {pipeline_mode = #tpu.pipeline_mode<synchronous>, transform_indices = @transform_2, window_bounds = array<i64: 1, 512>}, {pipeline_mode = #tpu.pipeline_mode<synchronous>, transform_indices = @transform_3, window_bounds = array<i64: 512, 128>}, {pipeline_mode = #tpu.pipeline_mode<synchronous>, transform_indices = @transform_4, window_bounds = array<i64: 1, 128>}, {pipeline_mode = #tpu.pipeline_mode<synchronous>, transform_indices = @transform_5, window_bounds = array<i64: 128, 512>}, {pipeline_mode = #tpu.pipeline_mode<synchronous>, transform_indices = @transform_6, window_bounds = array<i64: 1, 512>}, {pipeline_mode = #tpu.pipeline_mode<synchronous>, transform_indices = @transform_7, window_bounds = array<i64: 512, 896>}, {pipeline_mode = #tpu.pipeline_mode<synchronous>, transform_indices = @transform_8, window_bounds = array<i64: 1, 896>}, {transform_indices = @transform_9, window_bounds = array<i64: 16, 896>}, {transform_indices = @transform_10, window_bounds = array<i64: 16, 128>}]} {
    %c0 = arith.constant 0 : index
    %c0_0 = arith.constant 0 : index
    %0 = vector.load %arg1[%c0, %c0_0] : memref<16x896xbf16, #tpu.memory_space<vmem>>, vector<16x896xbf16>
    %c0_1 = arith.constant 0 : index
    %c0_2 = arith.constant 0 : index
    %1 = vector.load %arg2[%c0_1, %c0_2] : memref<896x512xbf16, #tpu.memory_space<vmem>>, vector<896x512xbf16>
    %cst = arith.constant dense<0.000000e+00> : vector<16x512xf32>
    %2 = tpu.matmul %0, %1, %cst {dimension_numbers = #tpu.dot_dimension_numbers<[1], [0], [0], [1], [0, 0, 1, 1], [], []>} : vector<16x896xbf16>, vector<896x512xbf16>, vector<16x512xf32> -> vector<16x512xf32>
    %c0_3 = arith.constant 0 : index
    %c0_4 = arith.constant 0 : index
    %3 = vector.load %arg3[%c0_3, %c0_4] : memref<1x512xf32, #tpu.memory_space<vmem>>, vector<1x512xf32>
    %4 = vector.broadcast %3 : vector<1x512xf32> to vector<16x512xf32>
    %5 = arith.addf %2, %4 : vector<16x512xf32>
    %cst_5 = arith.constant 0.000000e+00 : f32
    %6 = vector.broadcast %cst_5 : f32 to vector<16x512xf32>
    %7 = arith.maximumf %5, %6 : vector<16x512xf32>
    %8 = arith.truncf %7 : vector<16x512xf32> to vector<16x512xbf16>
    %c0_6 = arith.constant 0 : index
    %c0_7 = arith.constant 0 : index
    %9 = vector.load %arg4[%c0_6, %c0_7] : memref<512x128xbf16, #tpu.memory_space<vmem>>, vector<512x128xbf16>
    %cst_8 = arith.constant dense<0.000000e+00> : vector<16x128xf32>
    %10 = tpu.matmul %8, %9, %cst_8 {dimension_numbers = #tpu.dot_dimension_numbers<[1], [0], [0], [1], [0, 0, 1, 1], [], []>} : vector<16x512xbf16>, vector<512x128xbf16>, vector<16x128xf32> -> vector<16x128xf32>
    %c0_9 = arith.constant 0 : index
    %c0_10 = arith.constant 0 : index
    %11 = vector.load %arg5[%c0_9, %c0_10] : memref<1x128xf32, #tpu.memory_space<vmem>>, vector<1x128xf32>
    %12 = vector.broadcast %11 : vector<1x128xf32> to vector<16x128xf32>
    %13 = arith.addf %10, %12 : vector<16x128xf32>
    %c0_11 = arith.constant 0 : index
    %c0_12 = arith.constant 0 : index
    %14 = vector.load %arg11[%c0_11, %c0_12] : memref<16x128xf32, #tpu.memory_space<vmem>>, vector<16x128xf32>
    tpu.vector_store %arg11[%c0_11, %c0_12], %13 {strides = array<i32>} : memref<16x128xf32, #tpu.memory_space<vmem>>, vector<16x128xf32>,
    %15 = arith.truncf %13 : vector<16x128xf32> to vector<16x128xbf16>
    %c0_13 = arith.constant 0 : index
    %c0_14 = arith.constant 0 : index
    %16 = vector.load %arg6[%c0_13, %c0_14] : memref<128x512xbf16, #tpu.memory_space<vmem>>, vector<128x512xbf16>
    %cst_15 = arith.constant dense<0.000000e+00> : vector<16x512xf32>
    %17 = tpu.matmul %15, %16, %cst_15 {dimension_numbers = #tpu.dot_dimension_numbers<[1], [0], [0], [1], [0, 0, 1, 1], [], []>} : vector<16x128xbf16>, vector<128x512xbf16>, vector<16x512xf32> -> vector<16x512xf32>
    %c0_16 = arith.constant 0 : index
    %c0_17 = arith.constant 0 : index
    %18 = vector.load %arg7[%c0_16, %c0_17] : memref<1x512xf32, #tpu.memory_space<vmem>>, vector<1x512xf32>
    %19 = vector.broadcast %18 : vector<1x512xf32> to vector<16x512xf32>
    %20 = arith.addf %17, %19 : vector<16x512xf32>
    %cst_18 = arith.constant 0.000000e+00 : f32
    %21 = vector.broadcast %cst_18 : f32 to vector<16x512xf32>
    %22 = arith.maximumf %20, %21 : vector<16x512xf32>
    %23 = arith.truncf %22 : vector<16x512xf32> to vector<16x512xbf16>
    %c0_19 = arith.constant 0 : index
    %c0_20 = arith.constant 0 : index
    %24 = vector.load %arg8[%c0_19, %c0_20] : memref<512x896xbf16, #tpu.memory_space<vmem>>, vector<512x896xbf16>
    %cst_21 = arith.constant dense<0.000000e+00> : vector<16x896xf32>
    %25 = tpu.matmul %23, %24, %cst_21 {dimension_numbers = #tpu.dot_dimension_numbers<[1], [0], [0], [1], [0, 0, 1, 1], [], []>} : vector<16x512xbf16>, vector<512x896xbf16>, vector<16x896xf32> -> vector<16x896xf32>
    %c0_22 = arith.constant 0 : index
    %c0_23 = arith.constant 0 : index
    %26 = vector.load %arg9[%c0_22, %c0_23] : memref<1x896xf32, #tpu.memory_space<vmem>>, vector<1x896xf32>
    %27 = vector.broadcast %26 : vector<1x896xf32> to vector<16x896xf32>
    %28 = arith.addf %25, %27 : vector<16x896xf32>
    %29 = arith.negf %28 : vector<16x896xf32>
    %30 = math.exp %29 : vector<16x896xf32>
    %cst_24 = arith.constant 1.000000e+00 : f32
    %31 = vector.broadcast %cst_24 : f32 to vector<16x896xf32>
    %32 = arith.addf %31, %30 : vector<16x896xf32>
    %33 = arith.divf %31, %32 : vector<16x896xf32>
    %c0_25 = arith.constant 0 : index
    %c0_26 = arith.constant 0 : index
    %34 = vector.load %arg10[%c0_25, %c0_26] : memref<16x896xf32, #tpu.memory_space<vmem>>, vector<16x896xf32>
    tpu.vector_store %arg10[%c0_25, %c0_26], %33 {strides = array<i32>} : memref<16x896xf32, #tpu.memory_space<vmem>>, vector<16x896xf32>,
    return
  }
  func.func @transform_0(%arg0: i32) -> (i32, i32) {
    %c0_i32 = arith.constant 0 : i32
    %c0_i32_0 = arith.constant 0 : i32
    return %arg0, %c0_i32 : i32, i32
  }
  func.func @transform_1(%arg0: i32) -> (i32, i32) {
    %c0_i32 = arith.constant 0 : i32
    %c0_i32_0 = arith.constant 0 : i32
    %c0_i32_1 = arith.constant 0 : i32
    return %c0_i32, %c0_i32_0 : i32, i32
  }
  func.func @transform_2(%arg0: i32) -> (i32, i32) {
    %c0_i32 = arith.constant 0 : i32
    %c0_i32_0 = arith.constant 0 : i32
    %c0_i32_1 = arith.constant 0 : i32
    return %c0_i32, %c0_i32_0 : i32, i32
  }
  func.func @transform_3(%arg0: i32) -> (i32, i32) {
    %c0_i32 = arith.constant 0 : i32
    %c0_i32_0 = arith.constant 0 : i32
    %c0_i32_1 = arith.constant 0 : i32
    return %c0_i32, %c0_i32_0 : i32, i32
  }
  func.func @transform_4(%arg0: i32) -> (i32, i32) {
    %c0_i32 = arith.constant 0 : i32
    %c0_i32_0 = arith.constant 0 : i32
    %c0_i32_1 = arith.constant 0 : i32
    return %c0_i32, %c0_i32_0 : i32, i32
  }
  func.func @transform_5(%arg0: i32) -> (i32, i32) {
    %c0_i32 = arith.constant 0 : i32
    %c0_i32_0 = arith.constant 0 : i32
    %c0_i32_1 = arith.constant 0 : i32
    return %c0_i32, %c0_i32_0 : i32, i32
  }
  func.func @transform_6(%arg0: i32) -> (i32, i32) {
    %c0_i32 = arith.constant 0 : i32
    %c0_i32_0 = arith.constant 0 : i32
    %c0_i32_1 = arith.constant 0 : i32
    return %c0_i32, %c0_i32_0 : i32, i32
  }
  func.func @transform_7(%arg0: i32) -> (i32, i32) {
    %c0_i32 = arith.constant 0 : i32
    %c0_i32_0 = arith.constant 0 : i32
    %c0_i32_1 = arith.constant 0 : i32
    return %c0_i32, %c0_i32_0 : i32, i32
  }
  func.func @transform_8(%arg0: i32) -> (i32, i32) {
    %c0_i32 = arith.constant 0 : i32
    %c0_i32_0 = arith.constant 0 : i32
    %c0_i32_1 = arith.constant 0 : i32
    return %c0_i32, %c0_i32_0 : i32, i32
  }
  func.func @transform_9(%arg0: i32) -> (i32, i32) {
    %c0_i32 = arith.constant 0 : i32
    %c0_i32_0 = arith.constant 0 : i32
    return %arg0, %c0_i32 : i32, i32
  }
  func.func @transform_10(%arg0: i32) -> (i32, i32) {
    %c0_i32 = arith.constant 0 : i32
    %c0_i32_0 = arith.constant 0 : i32
    return %arg0, %c0_i32 : i32, i32
  }
}

</mosaic_0001>

<bundles_post_ra>
// kernel: rvae_forward.1
= control target key start
LH: loop header
LB: loop body
LE: loop exit
PB: predicated region body
PF: predicated region fallthrough
CT: control target
= control target key end

     0   :  { %v5834_v1 = vmov 0   ;;  %s7600_s1 = inlined_call_operand.vmem [shape: bf16[896,512], index: 1, kind: input, shape index: {}]   ;;  %s7601_s0 = inlined_call_operand.vmem [shape: bf16[16,896], index: 0, kind: input, shape index: {}]   ;;  %s7602_s3 = inlined_call_operand.vmem [shape: bf16[512,128], index: 3, kind: input, shape index: {}]   ;;  %s7603_s2 = inlined_call_operand.vmem [shape: f32[1,512], index: 2, kind: input, shape index: {}]   ;;  %s7604_s5 = inlined_call_operand.vmem [shape: bf16[128,512], index: 5, kind: input, shape index: {}]   ;;  %s7605_s7 = inlined_call_operand.vmem [shape: bf16[512,896], index: 7, kind: input, shape index: {}]   ;;  %s7606_s4 = inlined_call_operand.vmem [shape: f32[1,128], index: 4, kind: input, shape index: {}]   ;;  %s7607_s10 = inlined_call_operand.vmem [shape: f32[16,128], index: 10, kind: output, shape index: {1}]   ;;  %s7608_s6 = inlined_call_operand.vmem [shape: f32[1,512], index: 6, kind: input, shape index: {}]   ;;  %s7609_s8 = inlined_call_operand.vmem [shape: f32[1,896], index: 8, kind: input, shape index: {}]   ;;  %s7610_s9 = inlined_call_operand.vmem [shape: f32[16,896], index: 9, kind: output, shape index: {0}]  }
   0x1   :  { %v5031_v0 = vld [vmem:[%s7600_s1 + $0x4] ss:$16 sps:$4 sm:$0xff]   ;;  %1606 = vmatprep.mubr.bf16.mxu1 %v5834_v1  ;;  %v5035_v3 = vld [vmem:[%s7600_s1] ss:$16 sps:$4 sm:$0xff]   ;;  %v5084_v34 = vld [vmem:[%s7600_s1 + $0xc] ss:$16 sps:$4 sm:$0xff]  }
   0x2   :  { %v5033_v2 = vld [vmem:[%s7600_s1 + $0x604] ss:$16 sps:$4 sm:$0xff]   ;;  %1445 = vmatprep.subr.bf16.mxu0 %v5031_v0  ;;  %v5036_v4 = vld [vmem:[%s7600_s1 + $0x600] ss:$16 sps:$4 sm:$0xff]   ;;  %v5082_v36 = vld [vmem:[%s7600_s1 + $0x8] ss:$16 sps:$4 sm:$0xff]  }
   0x3   :  { %1574 = vmatprep.subr.bf16.mxu1 %v5033_v2  ;;  %v5037_v5 = vld [vmem:[%s7600_s1 + $0x24] ss:$16 sps:$4 sm:$0xff]   ;;  %1446 = vmatpush1.bf16.msra.mxu0 %v5035_v3  ;;  %v5041_v7 = vld [vmem:[%s7600_s1 + $0x20] ss:$16 sps:$4 sm:$0xff]   ;;  %v5090_v39 = vld [vmem:[%s7600_s1 + $0x2c] ss:$16 sps:$4 sm:$0xff]  }
   0x4   :  { %1575 = vmatpush1.bf16.msra.mxu1 %v5036_v4  ;;  %v5039_v6 = vld [vmem:[%s7600_s1 + $0x624] ss:$16 sps:$4 sm:$0xff]   ;;  %1447 = vmatprep.subr.bf16.mxu0 %v5037_v5  ;;  %v5042_v8 = vld [vmem:[%s7600_s1 + $0x620] ss:$16 sps:$4 sm:$0xff]   ;;  %v5088_v40 = vld [vmem:[%s7600_s1 + $0x28] ss:$16 sps:$4 sm:$0xff]  }
   0x5   :  { %1576 = vmatprep.subr.bf16.mxu1 %v5039_v6  ;;  %v5043_v9 = vld [vmem:[%s7600_s1 + $0x44] ss:$16 sps:$4 sm:$0xff]   ;;  %v5047_v11 = vld [vmem:[%s7600_s1 + $0x40] ss:$16 sps:$4 sm:$0xff]   ;;  %v5096_v43 = vld [vmem:[%s7600_s1 + $0x4c] ss:$16 sps:$4 sm:$0xff]  }
   0x6   :  { %v5045_v10 = vld [vmem:[%s7600_s1 + $0x644] ss:$16 sps:$4 sm:$0xff]   ;;  %v5048_v12 = vld [vmem:[%s7600_s1 + $0x640] ss:$16 sps:$4 sm:$0xff]   ;;  %v5094_v44 = vld [vmem:[%s7600_s1 + $0x48] ss:$16 sps:$4 sm:$0xff]  }
   0x7   :  { %1448 = vmatpush1.bf16.msra.mxu0 %v5041_v7  ;;  %v5049_v13 = vld [vmem:[%s7600_s1 + $0x64] ss:$16 sps:$4 sm:$0xff]   ;;  %v5053_v15 = vld [vmem:[%s7600_s1 + $0x60] ss:$16 sps:$4 sm:$0xff]   ;;  %v5102_v47 = vld [vmem:[%s7600_s1 + $0x6c] ss:$16 sps:$4 sm:$0xff]  }
   0x8   :  { %1577 = vmatpush1.bf16.msra.mxu1 %v5042_v8  ;;  %1449 = vmatprep.subr.bf16.mxu0 %v5043_v9  ;;  %v5051_v14 = vld [vmem:[%s7600_s1 + $0x664] ss:$16 sps:$4 sm:$0xff]   ;;  %v5054_v16 = vld [vmem:[%s7600_s1 + $0x660] ss:$16 sps:$4 sm:$0xff]   ;;  %v5100_v48 = vld [vmem:[%s7600_s1 + $0x68] ss:$16 sps:$4 sm:$0xff]  }
   0x9   :  { %1578 = vmatprep.subr.bf16.mxu1 %v5045_v10  ;;  %v5055_v17 = vld [vmem:[%s7600_s1 + $0x84] ss:$16 sps:$4 sm:$0xff]   ;;  %v5059_v19 = vld [vmem:[%s7600_s1 + $0x80] ss:$16 sps:$4 sm:$0xff]   ;;  %v5108_v52 = vld [vmem:[%s7600_s1 + $0x8c] ss:$16 sps:$4 sm:$0xff]  }
   0xa   :  { %v5057_v18 = vld [vmem:[%s7600_s1 + $0x684] ss:$16 sps:$4 sm:$0xff]   ;;  %v5060_v20 = vld [vmem:[%s7600_s1 + $0x680] ss:$16 sps:$4 sm:$0xff]   ;;  %v5106_v53 = vld [vmem:[%s7600_s1 + $0x88] ss:$16 sps:$4 sm:$0xff]  }
   0xb   :  { %1450 = vmatpush1.bf16.msra.mxu0 %v5047_v11  ;;  %v5061_v21 = vld [vmem:[%s7600_s1 + $0xa4] ss:$16 sps:$4 sm:$0xff]   ;;  %v5065_v23 = vld [vmem:[%s7600_s1 + $0xa0] ss:$16 sps:$4 sm:$0xff]   ;;  %v5114_v56 = vld [vmem:[%s7600_s1 + $0xac] ss:$16 sps:$4 sm:$0xff]  }
   0xc   :  { %1579 = vmatpush1.bf16.msra.mxu1 %v5048_v12  ;;  %1451 = vmatprep.subr.bf16.mxu0 %v5049_v13  ;;  %v5063_v22 = vld [vmem:[%s7600_s1 + $0x6a4] ss:$16 sps:$4 sm:$0xff]   ;;  %v5066_v24 = vld [vmem:[%s7600_s1 + $0x6a0] ss:$16 sps:$4 sm:$0xff]   ;;  %v5112_v57 = vld [vmem:[%s7600_s1 + $0xa8] ss:$16 sps:$4 sm:$0xff]  }
   0xd   :  { %1580 = vmatprep.subr.bf16.mxu1 %v5051_v14  ;;  %v5067_v25 = vld [vmem:[%s7600_s1 + $0xc4] ss:$16 sps:$4 sm:$0xff]   ;;  %v5071_v27 = vld [vmem:[%s7600_s1 + $0xc0] ss:$16 sps:$4 sm:$0xff]   ;;  %v5120_v60 = vld [vmem:[%s7600_s1 + $0xcc] ss:$16 sps:$4 sm:$0xff]  }
   0xe   :  { %v5069_v26 = vld [vmem:[%s7600_s1 + $0x6c4] ss:$16 sps:$4 sm:$0xff]   ;;  %v5072_v28 = vld [vmem:[%s7600_s1 + $0x6c0] ss:$16 sps:$4 sm:$0xff]   ;;  %v5118_v61 = vld [vmem:[%s7600_s1 + $0xc8] ss:$16 sps:$4 sm:$0xff]  }
   0xf   :  { %1452 = vmatpush1.bf16.msra.mxu0 %v5053_v15  ;;  %v5073_v29 = vld [vmem:[%s7600_s1 + $0xe4] ss:$16 sps:$4 sm:$0xff]   ;;  %v5077_v31 = vld [vmem:[%s7600_s1 + $0xe0] ss:$16 sps:$4 sm:$0xff]   ;;  %v5126_v0 = vld [vmem:[%s7600_s1 + $0xec] ss:$16 sps:$4 sm:$0xff]  }
  0x10   :  { %1581 = vmatpush1.bf16.msra.mxu1 %v5054_v16  ;;  %1453 = vmatprep.subr.bf16.mxu0 %v5055_v17  ;;  %v5075_v30 = vld [vmem:[%s7600_s1 + $0x6e4] ss:$16 sps:$4 sm:$0xff]   ;;  %v5078_v32 = vld [vmem:[%s7600_s1 + $0x6e0] ss:$16 sps:$4 sm:$0xff]   ;;  %v5124_v2 = vld [vmem:[%s7600_s1 + $0xe8] ss:$16 sps:$4 sm:$0xff]  }
  0x11   :  { %1582 = vmatprep.subr.bf16.mxu1 %v5057_v18  ;;  %v5079_v33 = vld [vmem:[%s7600_s1 + $0x104] ss:$16 sps:$4 sm:$0xff]   ;;  %v5085_v37 = vld [vmem:[%s7600_s1 + $0x100] ss:$16 sps:$4 sm:$0xff]   ;;  %v5136_v5 = vld [vmem:[%s7600_s1 + $0x10c] ss:$16 sps:$4 sm:$0xff]  }
  0x12   :  { %v5081_v35 = vld [vmem:[%s7601_s0 + $0x18] ss:$28 sps:$4 sm:$0xff]   ;;  %v5091_v41 = vld [vmem:[%s7600_s1 + $0x120] ss:$16 sps:$4 sm:$0xff]   ;;  %v5142_v10 = vld [vmem:[%s7600_s1 + $0x12c] ss:$16 sps:$4 sm:$0xff]  }
  0x13   :  { %1454 = vmatpush1.bf16.msra.mxu0 %v5059_v19  ;;  %v5086_v38 = vld [vmem:[%s7600_s1 + $0x124] ss:$16 sps:$4 sm:$0xff]   ;;  %v5097_v45 = vld [vmem:[%s7600_s1 + $0x140] ss:$16 sps:$4 sm:$0xff]   ;;  %v5134_v8 = vld [vmem:[%s7600_s1 + $0x108] ss:$16 sps:$4 sm:$0xff]  }
  0x14   :  { %1583 = vmatpush1.bf16.msra.mxu1 %v5060_v20  ;;  %1455 = vmatprep.subr.bf16.mxu0 %v5061_v21  ;;  %v5092_v42 = vld [vmem:[%s7600_s1 + $0x144] ss:$16 sps:$4 sm:$0xff]   ;;  %v5103_v49 = vld [vmem:[%s7600_s1 + $0x160] ss:$16 sps:$4 sm:$0xff]   ;;  %v5140_v12 = vld [vmem:[%s7600_s1 + $0x128] ss:$16 sps:$4 sm:$0xff]  }
  0x15   :  { %1584 = vmatprep.subr.bf16.mxu1 %v5063_v22  ;;  %v5098_v46 = vld [vmem:[%s7600_s1 + $0x164] ss:$16 sps:$4 sm:$0xff]   ;;  %v5109_v54 = vld [vmem:[%s7600_s1 + $0x180] ss:$16 sps:$4 sm:$0xff]   ;;  %v5148_v14 = vld [vmem:[%s7600_s1 + $0x14c] ss:$16 sps:$4 sm:$0xff]  }
  0x16   :  { %v5104_v50 = vld [vmem:[%s7600_s1 + $0x184] ss:$16 sps:$4 sm:$0xff]   ;;  %v5115_v58 = vld [vmem:[%s7600_s1 + $0x1a0] ss:$16 sps:$4 sm:$0xff]   ;;  %v5146_v16 = vld [vmem:[%s7600_s1 + $0x148] ss:$16 sps:$4 sm:$0xff]  }
  0x17   :  { %1456 = vmatpush1.bf16.msra.mxu0 %v5065_v23  ;;  %v5130_v51 = vld [vmem:[%s7601_s0 + $0x4] ss:$28 sps:$4 sm:$0xff]   ;;  %v5154_v18 = vld [vmem:[%s7600_s1 + $0x16c] ss:$16 sps:$4 sm:$0xff]   ;;  %v5152_v20 = vld [vmem:[%s7600_s1 + $0x168] ss:$16 sps:$4 sm:$0xff]  }
  0x18   :  { %1585 = vmatpush1.bf16.msra.mxu1 %v5066_v24  ;;  %1457 = vmatprep.subr.bf16.mxu0 %v5067_v25  ;;  %v5110_v55 = vld [vmem:[%s7600_s1 + $0x1a4] ss:$16 sps:$4 sm:$0xff]   ;;  %v5121_v62 = vld [vmem:[%s7600_s1 + $0x1c0] ss:$16 sps:$4 sm:$0xff]   ;;  %v5160_v22 = vld [vmem:[%s7600_s1 + $0x18c] ss:$16 sps:$4 sm:$0xff]  }
  0x19   :  { %1586 = vmatprep.subr.bf16.mxu1 %v5069_v26  ;;  %1477 = vmatprep.mubr.bf16.mxu0 %v5130_v51  ;;  %v5116_v59 = vld [vmem:[%s7600_s1 + $0x1c4] ss:$16 sps:$4 sm:$0xff]   ;;  %v5127_v3 = vld [vmem:[%s7600_s1 + $0x1e0] ss:$16 sps:$4 sm:$0xff]   ;;  %v5158_v24 = vld [vmem:[%s7600_s1 + $0x188] ss:$16 sps:$4 sm:$0xff]  }
  0x1a   :  { %v5122_v63 = vld [vmem:[%s7600_s1 + $0x1e4] ss:$16 sps:$4 sm:$0xff]   ;;  %v6098_v6 = vld [vmem:[%s7601_s0] ss:$28 sps:$4 sm:$0xff]  }
  0x1b   :  { %1458 = vmatpush1.bf16.msra.mxu0 %v5071_v27  ;;  %v5133_v4 = vld [vmem:[%s7600_s1 + $0x204] ss:$16 sps:$4 sm:$0xff]   ;;  %v5131_v7 = vld [vmem:[%s7600_s1 + $0x200] ss:$16 sps:$4 sm:$0xff]   ;;  %v5166_v26 = vld [vmem:[%s7600_s1 + $0x1ac] ss:$16 sps:$4 sm:$0xff]  }
  0x1c   :  { %1587 = vmatpush1.bf16.msra.mxu1 %v5072_v28  ;;  %1459 = vmatprep.subr.bf16.mxu0 %v5073_v29  ;;  %v5139_v9 = vld [vmem:[%s7600_s1 + $0x224] ss:$16 sps:$4 sm:$0xff]   ;;  %v5137_v11 = vld [vmem:[%s7600_s1 + $0x220] ss:$16 sps:$4 sm:$0xff]   ;;  %v5164_v28 = vld [vmem:[%s7600_s1 + $0x1a8] ss:$16 sps:$4 sm:$0xff]  }
  0x1d   :  { %1588 = vmatprep.subr.bf16.mxu1 %v5075_v30  ;;  %v5145_v13 = vld [vmem:[%s7600_s1 + $0x244] ss:$16 sps:$4 sm:$0xff]   ;;  %v5143_v15 = vld [vmem:[%s7600_s1 + $0x240] ss:$16 sps:$4 sm:$0xff]   ;;  %v5172_v30 = vld [vmem:[%s7600_s1 + $0x1cc] ss:$16 sps:$4 sm:$0xff]  }
  0x1e   :  { %v5151_v17 = vld [vmem:[%s7600_s1 + $0x264] ss:$16 sps:$4 sm:$0xff]   ;;  %v5149_v19 = vld [vmem:[%s7600_s1 + $0x260] ss:$16 sps:$4 sm:$0xff]  }
  0x1f   :  { %1460 = vmatpush1.bf16.msra.mxu0 %v5077_v31  ;;  %v5157_v21 = vld [vmem:[%s7600_s1 + $0x284] ss:$16 sps:$4 sm:$0xff]   ;;  %v5155_v23 = vld [vmem:[%s7600_s1 + $0x280] ss:$16 sps:$4 sm:$0xff]  }
  0x20   :  { %1589 = vmatpush1.bf16.msra.mxu1 %v5078_v32  ;;  %1461 = vmatprep.subr.bf16.mxu0 %v5079_v33  ;;  %v5163_v25 = vld [vmem:[%s7600_s1 + $0x2a4] ss:$16 sps:$4 sm:$0xff]   ;;  %v5161_v27 = vld [vmem:[%s7600_s1 + $0x2a0] ss:$16 sps:$4 sm:$0xff]   ;;  %v5170_v32 = vld [vmem:[%s7600_s1 + $0x1c8] ss:$16 sps:$4 sm:$0xff]  }
  0x21   :  { %1617 = vmatprep.subr.bf16.mxu1 %v5084_v34  ;;  %v5169_v29 = vld [vmem:[%s7600_s1 + $0x2c4] ss:$16 sps:$4 sm:$0xff]   ;;  %v5167_v31 = vld [vmem:[%s7600_s1 + $0x2c0] ss:$16 sps:$4 sm:$0xff]   ;;  %v5229_v34 = vld [vmem:[%s7601_s0 + $0xc] ss:$28 sps:$4 sm:$0xff]  }
  0x22   :  { %v5175_v33 = vld [vmem:[%s7600_s1 + $0x2e4] ss:$16 sps:$4 sm:$0xff]  }
  0x23   :  { %1607 = vmatmul.mubr.bf16.vlgmr.msra.gmra.mrb[0].mxu1 %v5081_v35  ;;  %1462 = vmatpush1.bf16.msra.mxu0 %v5085_v37  ;;  %v5178_v35 = vld [vmem:[%s7600_s1 + $0x1ec] ss:$16 sps:$4 sm:$0xff]   ;;  %v5176_v37 = vld [vmem:[%s7600_s1 + $0x1e8] ss:$16 sps:$4 sm:$0xff]  }
  0x24   :  { %1618 = vmatpush1.bf16.msra.mxu1 %v5082_v36  ;;  %1463 = vmatprep.subr.bf16.mxu0 %v5086_v38  ;;  %v5173_v36 = vld [vmem:[%s7600_s1 + $0x2e0] ss:$16 sps:$4 sm:$0xff]   ;;  %v5181_v38 = vld [vmem:[%s7600_s1 + $0x304] ss:$16 sps:$4 sm:$0xff]  }
  0x25   :  { %1619 = vmatprep.subr.bf16.mxu1 %v5090_v39  ;;  %1649 = vmatprep.mubr.bf16.mxu1 %v5130_v51  ;;  %v5184_v39 = vld [vmem:[%s7600_s1 + $0x20c] ss:$16 sps:$4 sm:$0xff]  }
  0x26   :  { %v5202_v51 = vld [vmem:[%s7600_s1 + $0x26c] ss:$16 sps:$4 sm:$0xff]  }
  0x27   :  { %1464 = vmatpush1.bf16.msra.mxu0 %v5091_v41  ;;  %v5182_v41 = vld [vmem:[%s7600_s1 + $0x208] ss:$16 sps:$4 sm:$0xff]  }
  0x28   :  { %1620 = vmatpush1.bf16.msra.mxu1 %v5088_v40  ;;  %1465 = vmatprep.subr.bf16.mxu0 %v5092_v42  ;;  %v5179_v40 = vld [vmem:[%s7600_s1 + $0x300] ss:$16 sps:$4 sm:$0xff]   ;;  %v5187_v42 = vld [vmem:[%s7600_s1 + $0x324] ss:$16 sps:$4 sm:$0xff]  }
  0x29   :  { %1621 = vmatprep.subr.bf16.mxu1 %v5096_v43  ;;  %v5190_v43 = vld [vmem:[%s7600_s1 + $0x22c] ss:$16 sps:$4 sm:$0xff]  }
  0x2b   :  { %1466 = vmatpush1.bf16.msra.mxu0 %v5097_v45  ;;  %v5188_v45 = vld [vmem:[%s7600_s1 + $0x228] ss:$16 sps:$4 sm:$0xff]  }
  0x2c   :  { %1622 = vmatpush1.bf16.msra.mxu1 %v5094_v44  ;;  %1467 = vmatprep.subr.bf16.mxu0 %v5098_v46  ;;  %v5185_v44 = vld [vmem:[%s7600_s1 + $0x320] ss:$16 sps:$4 sm:$0xff]   ;;  %v5193_v46 = vld [vmem:[%s7600_s1 + $0x344] ss:$16 sps:$4 sm:$0xff]  }
  0x2d   :  { %1623 = vmatprep.subr.bf16.mxu1 %v5102_v47  ;;  %v5196_v47 = vld [vmem:[%s7600_s1 + $0x24c] ss:$16 sps:$4 sm:$0xff]  }
  0x2f   :  { %1468 = vmatpush1.bf16.msra.mxu0 %v5103_v49  ;;  %v5194_v49 = vld [vmem:[%s7600_s1 + $0x248] ss:$16 sps:$4 sm:$0xff]  }
  0x30   :  { %1624 = vmatpush1.bf16.msra.mxu1 %v5100_v48  ;;  %1469 = vmatprep.subr.bf16.mxu0 %v5104_v50  ;;  %v5191_v48 = vld [vmem:[%s7600_s1 + $0x340] ss:$16 sps:$4 sm:$0xff]   ;;  %v5199_v50 = vld [vmem:[%s7600_s1 + $0x364] ss:$16 sps:$4 sm:$0xff]  }
  0x31   :  { %1625 = vmatprep.subr.bf16.mxu1 %v5108_v52  ;;  %v5197_v52 = vld [vmem:[%s7600_s1 + $0x360] ss:$16 sps:$4 sm:$0xff]  }
  0x33   :  { %1470 = vmatpush1.bf16.msra.mxu0 %v5109_v54  ;;  %v5205_v54 = vld [vmem:[%s7600_s1 + $0x384] ss:$16 sps:$4 sm:$0xff]  }
  0x34   :  { %1626 = vmatpush1.bf16.msra.mxu1 %v5106_v53  ;;  %1471 = vmatprep.subr.bf16.mxu0 %v5110_v55  ;;  %v5200_v53 = vld [vmem:[%s7600_s1 + $0x268] ss:$16 sps:$4 sm:$0xff]   ;;  %v5208_v55 = vld [vmem:[%s7600_s1 + $0x28c] ss:$16 sps:$4 sm:$0xff]  }
  0x35   :  { %1627 = vmatprep.subr.bf16.mxu1 %v5114_v56  ;;  %v5203_v56 = vld [vmem:[%s7600_s1 + $0x380] ss:$16 sps:$4 sm:$0xff]  }
  0x37   :  { %1472 = vmatpush1.bf16.msra.mxu0 %v5115_v58  ;;  %v5211_v58 = vld [vmem:[%s7600_s1 + $0x3a4] ss:$16 sps:$4 sm:$0xff]  }
  0x38   :  { %1628 = vmatpush1.bf16.msra.mxu1 %v5112_v57  ;;  %1473 = vmatprep.subr.bf16.mxu0 %v5116_v59  ;;  %v5206_v57 = vld [vmem:[%s7600_s1 + $0x288] ss:$16 sps:$4 sm:$0xff]   ;;  %v5214_v59 = vld [vmem:[%s7600_s1 + $0x2ac] ss:$16 sps:$4 sm:$0xff]  }
  0x39   :  { %1629 = vmatprep.subr.bf16.mxu1 %v5120_v60  ;;  %v5209_v60 = vld [vmem:[%s7600_s1 + $0x3a0] ss:$16 sps:$4 sm:$0xff]  }
  0x3b   :  { %1474 = vmatpush1.bf16.msra.mxu0 %v5121_v62  ;;  %v5217_v62 = vld [vmem:[%s7600_s1 + $0x3c4] ss:$16 sps:$4 sm:$0xff]  }
  0x3c   :  { %1630 = vmatpush1.bf16.msra.mxu1 %v5118_v61  ;;  %1475 = vmatprep.subr.bf16.mxu0 %v5122_v63  ;;  %v5212_v61 = vld [vmem:[%s7600_s1 + $0x2a8] ss:$16 sps:$4 sm:$0xff]   ;;  %v5220_v63 = vld [vmem:[%s7600_s1 + $0x2cc] ss:$16 sps:$4 sm:$0xff]  }
  0x3d   :  { %1631 = vmatprep.subr.bf16.mxu1 %v5126_v0  ;;  %v5215_v0 = vld [vmem:[%s7600_s1 + $0x3c0] ss:$16 sps:$4 sm:$0xff]  }
  0x3f   :  { %1476 = vmatpush1.bf16.msra.mxu0 %v5127_v3  ;;  %v5223_v3 = vld [vmem:[%s7600_s1 + $0x3e4] ss:$16 sps:$4 sm:$0xff]  }
  0x40   :  { %1632 = vmatpush1.bf16.msra.mxu1 %v5124_v2  ;;  %1488 = vmatprep.subr.bf16.mxu0 %v5133_v4  ;;  %v5218_v2 = vld [vmem:[%s7600_s1 + $0x2c8] ss:$16 sps:$4 sm:$0xff]   ;;  %v5226_v4 = vld [vmem:[%s7600_s1 + $0x2ec] ss:$16 sps:$4 sm:$0xff]  }
  0x41   :  { %1633 = vmatprep.subr.bf16.mxu1 %v5136_v5  ;;  %v5221_v5 = vld [vmem:[%s7600_s1 + $0x3e0] ss:$16 sps:$4 sm:$0xff]  }
  0x42   :  { %1478 = vmatmul.mubr.bf16.vlgmr.msra.gmra.mrb[0].mxu0 %v6098_v6 }
  0x43   :  { %1489 = vmatpush1.bf16.msra.mxu0 %v5131_v7  ;;  %1520 = vmatprep.mubr.bf16.mxu0 %v5229_v34  ;;  %v5232_v7 = vld [vmem:[%s7600_s1 + $0x404] ss:$16 sps:$4 sm:$0xff]  }
  0x44   :  { %1634 = vmatpush1.bf16.msra.mxu1 %v5134_v8  ;;  %1490 = vmatprep.subr.bf16.mxu0 %v5139_v9  ;;  %v5235_v8 = vld [vmem:[%s7600_s1 + $0x30c] ss:$16 sps:$4 sm:$0xff]   ;;  %v6300_v9 = vld [vmem:[%s7601_s0 + $0x8] ss:$28 sps:$4 sm:$0xff]  }
  0x45   :  { %1635 = vmatprep.subr.bf16.mxu1 %v5142_v10  ;;  %v5230_v10 = vld [vmem:[%s7600_s1 + $0x400] ss:$16 sps:$4 sm:$0xff]  }
  0x47   :  { %1491 = vmatpush1.bf16.msra.mxu0 %v5137_v11  ;;  %v5233_v11 = vld [vmem:[%s7600_s1 + $0x308] ss:$16 sps:$4 sm:$0xff]  }
  0x48   :  { %1636 = vmatpush1.bf16.msra.mxu1 %v5140_v12  ;;  %1492 = vmatprep.subr.bf16.mxu0 %v5145_v13  ;;  %v5238_v12 = vld [vmem:[%s7600_s1 + $0x424] ss:$16 sps:$4 sm:$0xff]   ;;  %v5241_v13 = vld [vmem:[%s7600_s1 + $0x32c] ss:$16 sps:$4 sm:$0xff]  }
  0x49   :  { %1637 = vmatprep.subr.bf16.mxu1 %v5148_v14  ;;  %v5236_v14 = vld [vmem:[%s7600_s1 + $0x420] ss:$16 sps:$4 sm:$0xff]  }
  0x4b   :  { %1493 = vmatpush1.bf16.msra.mxu0 %v5143_v15  ;;  %v5239_v15 = vld [vmem:[%s7600_s1 + $0x328] ss:$16 sps:$4 sm:$0xff]  }
  0x4c   :  { %1638 = vmatpush1.bf16.msra.mxu1 %v5146_v16  ;;  %1494 = vmatprep.subr.bf16.mxu0 %v5151_v17  ;;  %v5244_v16 = vld [vmem:[%s7600_s1 + $0x444] ss:$16 sps:$4 sm:$0xff]  }
  0x4d   :  { %1639 = vmatprep.subr.bf16.mxu1 %v5154_v18  ;;  %v6327_v17 = vld [vmem:[%s7601_s0 + $0x14] ss:$28 sps:$4 sm:$0xff]   ;;  %v5247_v18 = vld [vmem:[%s7600_s1 + $0x34c] ss:$16 sps:$4 sm:$0xff]  }
  0x4f   :  { %1495 = vmatpush1.bf16.msra.mxu0 %v5149_v19  ;;  %v5242_v19 = vld [vmem:[%s7600_s1 + $0x440] ss:$16 sps:$4 sm:$0xff]  }
  0x50   :  { %1640 = vmatpush1.bf16.msra.mxu1 %v5152_v20  ;;  %1496 = vmatprep.subr.bf16.mxu0 %v5157_v21  ;;  %v5245_v20 = vld [vmem:[%s7600_s1 + $0x348] ss:$16 sps:$4 sm:$0xff]   ;;  %v5250_v21 = vld [vmem:[%s7600_s1 + $0x464] ss:$16 sps:$4 sm:$0xff]  }
  0x51   :  { %1641 = vmatprep.subr.bf16.mxu1 %v5160_v22  ;;  %v5253_v22 = vld [vmem:[%s7600_s1 + $0x36c] ss:$16 sps:$4 sm:$0xff]  }
  0x53   :  { %1497 = vmatpush1.bf16.msra.mxu0 %v5155_v23  ;;  %v5248_v23 = vld [vmem:[%s7600_s1 + $0x460] ss:$16 sps:$4 sm:$0xff]  }
  0x54   :  { %1642 = vmatpush1.bf16.msra.mxu1 %v5158_v24  ;;  %1498 = vmatprep.subr.bf16.mxu0 %v5163_v25  ;;  %v5251_v24 = vld [vmem:[%s7600_s1 + $0x368] ss:$16 sps:$4 sm:$0xff]   ;;  %v5256_v25 = vld [vmem:[%s7600_s1 + $0x484] ss:$16 sps:$4 sm:$0xff]  }
  0x55   :  { %1643 = vmatprep.subr.bf16.mxu1 %v5166_v26  ;;  %v5259_v26 = vld [vmem:[%s7600_s1 + $0x38c] ss:$16 sps:$4 sm:$0xff]  }
  0x57   :  { %1499 = vmatpush1.bf16.msra.mxu0 %v5161_v27  ;;  %v5254_v27 = vld [vmem:[%s7600_s1 + $0x480] ss:$16 sps:$4 sm:$0xff]  }
  0x58   :  { %1644 = vmatpush1.bf16.msra.mxu1 %v5164_v28  ;;  %1500 = vmatprep.subr.bf16.mxu0 %v5169_v29  ;;  %v5257_v28 = vld [vmem:[%s7600_s1 + $0x388] ss:$16 sps:$4 sm:$0xff]   ;;  %v5262_v29 = vld [vmem:[%s7600_s1 + $0x4a4] ss:$16 sps:$4 sm:$0xff]  }
  0x59   :  { %1645 = vmatprep.subr.bf16.mxu1 %v5172_v30  ;;  %v5265_v30 = vld [vmem:[%s7600_s1 + $0x3ac] ss:$16 sps:$4 sm:$0xff]  }
  0x5b   :  { %1501 = vmatpush1.bf16.msra.mxu0 %v5167_v31  ;;  %v5260_v31 = vld [vmem:[%s7600_s1 + $0x4a0] ss:$16 sps:$4 sm:$0xff]  }
  0x5c   :  { %1646 = vmatpush1.bf16.msra.mxu1 %v5170_v32  ;;  %1502 = vmatprep.subr.bf16.mxu0 %v5175_v33  ;;  %v5263_v32 = vld [vmem:[%s7600_s1 + $0x3a8] ss:$16 sps:$4 sm:$0xff]   ;;  %v5268_v33 = vld [vmem:[%s7600_s1 + $0x4c4] ss:$16 sps:$4 sm:$0xff]  }
  0x5d   :  { %1647 = vmatprep.subr.bf16.mxu1 %v5178_v35  ;;  %v5266_v35 = vld [vmem:[%s7600_s1 + $0x4c0] ss:$16 sps:$4 sm:$0xff]  }
  0x5f   :  { %1503 = vmatpush1.bf16.msra.mxu0 %v5173_v36  ;;  %v5269_v36 = vld [vmem:[%s7600_s1 + $0x3c8] ss:$16 sps:$4 sm:$0xff]  }
  0x60   :  { %1648 = vmatpush1.bf16.msra.mxu1 %v5176_v37  ;;  %1504 = vmatprep.subr.bf16.mxu0 %v5181_v38  ;;  %v5274_v37 = vld [vmem:[%s7600_s1 + $0x4e4] ss:$16 sps:$4 sm:$0xff]   ;;  %v5277_v38 = vld [vmem:[%s7600_s1 + $0x3ec] ss:$16 sps:$4 sm:$0xff]  }
  0x61   :  { %1660 = vmatprep.subr.bf16.mxu1 %v5184_v39  ;;  %v5272_v39 = vld [vmem:[%s7600_s1 + $0x4e0] ss:$16 sps:$4 sm:$0xff]  }
  0x63   :  { %1650 = vmatmul.mubr.bf16.vlgmr.msra.gmra.mrb[4].mxu1 %v6098_v6  ;;  %1505 = vmatpush1.bf16.msra.mxu0 %v5179_v40  ;;  %v5224_v6 = vld [vmem:[%s7600_s1 + $0x2e8] ss:$16 sps:$4 sm:$0xff]  }
  0x64   :  { %1661 = vmatpush1.bf16.msra.mxu1 %v5182_v41  ;;  %1506 = vmatprep.subr.bf16.mxu0 %v5187_v42  ;;  %v5275_v40 = vld [vmem:[%s7600_s1 + $0x3e8] ss:$16 sps:$4 sm:$0xff]   ;;  %v5280_v41 = vld [vmem:[%s7600_s1 + $0x504] ss:$16 sps:$4 sm:$0xff]   ;;  %v5283_v42 = vld [vmem:[%s7600_s1 + $0x40c] ss:$16 sps:$4 sm:$0xff]  }
  0x65   :  { %1662 = vmatprep.subr.bf16.mxu1 %v5190_v43  ;;  %1692 = vmatprep.mubr.bf16.mxu1 %v5229_v34  ;;  %v5271_v34 = vld [vmem:[%s7600_s1 + $0x3cc] ss:$16 sps:$4 sm:$0xff]   ;;  %v5278_v43 = vld [vmem:[%s7600_s1 + $0x500] ss:$16 sps:$4 sm:$0xff]  }
  0x67   :  { %1507 = vmatpush1.bf16.msra.mxu0 %v5185_v44  ;;  %v5281_v44 = vld [vmem:[%s7600_s1 + $0x408] ss:$16 sps:$4 sm:$0xff]  }
  0x68   :  { %1663 = vmatpush1.bf16.msra.mxu1 %v5188_v45  ;;  %1508 = vmatprep.subr.bf16.mxu0 %v5193_v46  ;;  %v5286_v45 = vld [vmem:[%s7600_s1 + $0x524] ss:$16 sps:$4 sm:$0xff]   ;;  %v5289_v46 = vld [vmem:[%s7600_s1 + $0x42c] ss:$16 sps:$4 sm:$0xff]  }
  0x69   :  { %1664 = vmatprep.subr.bf16.mxu1 %v5196_v47  ;;  %v5284_v47 = vld [vmem:[%s7600_s1 + $0x520] ss:$16 sps:$4 sm:$0xff]  }
  0x6b   :  { %1509 = vmatpush1.bf16.msra.mxu0 %v5191_v48  ;;  %v5287_v48 = vld [vmem:[%s7600_s1 + $0x428] ss:$16 sps:$4 sm:$0xff]  }
  0x6c   :  { %1665 = vmatpush1.bf16.msra.mxu1 %v5194_v49  ;;  %1510 = vmatprep.subr.bf16.mxu0 %v5199_v50  ;;  %v5292_v49 = vld [vmem:[%s7600_s1 + $0x544] ss:$16 sps:$4 sm:$0xff]   ;;  %v5295_v50 = vld [vmem:[%s7600_s1 + $0x44c] ss:$16 sps:$4 sm:$0xff]  }
  0x6d   :  { %1666 = vmatprep.subr.bf16.mxu1 %v5202_v51  ;;  %v5290_v51 = vld [vmem:[%s7600_s1 + $0x540] ss:$16 sps:$4 sm:$0xff]  }
  0x6f   :  { %1511 = vmatpush1.bf16.msra.mxu0 %v5197_v52  ;;  %v5293_v52 = vld [vmem:[%s7600_s1 + $0x448] ss:$16 sps:$4 sm:$0xff]  }
  0x70   :  { %1667 = vmatpush1.bf16.msra.mxu1 %v5200_v53  ;;  %1512 = vmatprep.subr.bf16.mxu0 %v5205_v54  ;;  %v5298_v53 = vld [vmem:[%s7600_s1 + $0x564] ss:$16 sps:$4 sm:$0xff]   ;;  %v5301_v54 = vld [vmem:[%s7600_s1 + $0x46c] ss:$16 sps:$4 sm:$0xff]  }
  0x71   :  { %1668 = vmatprep.subr.bf16.mxu1 %v5208_v55  ;;  %v5296_v55 = vld [vmem:[%s7600_s1 + $0x560] ss:$16 sps:$4 sm:$0xff]  }
  0x73   :  { %1513 = vmatpush1.bf16.msra.mxu0 %v5203_v56  ;;  %v5299_v56 = vld [vmem:[%s7600_s1 + $0x468] ss:$16 sps:$4 sm:$0xff]  }
  0x74   :  { %1669 = vmatpush1.bf16.msra.mxu1 %v5206_v57  ;;  %1514 = vmatprep.subr.bf16.mxu0 %v5211_v58  ;;  %v5304_v57 = vld [vmem:[%s7600_s1 + $0x584] ss:$16 sps:$4 sm:$0xff]   ;;  %v5307_v58 = vld [vmem:[%s7600_s1 + $0x48c] ss:$16 sps:$4 sm:$0xff]  }
  0x75   :  { %1670 = vmatprep.subr.bf16.mxu1 %v5214_v59  ;;  %v5302_v59 = vld [vmem:[%s7600_s1 + $0x580] ss:$16 sps:$4 sm:$0xff]  }
  0x77   :  { %1515 = vmatpush1.bf16.msra.mxu0 %v5209_v60  ;;  %v5305_v60 = vld [vmem:[%s7600_s1 + $0x488] ss:$16 sps:$4 sm:$0xff]  }
  0x78   :  { %1671 = vmatpush1.bf16.msra.mxu1 %v5212_v61  ;;  %1516 = vmatprep.subr.bf16.mxu0 %v5217_v62  ;;  %v5310_v61 = vld [vmem:[%s7600_s1 + $0x5a4] ss:$16 sps:$4 sm:$0xff]   ;;  %v5313_v62 = vld [vmem:[%s7600_s1 + $0x4ac] ss:$16 sps:$4 sm:$0xff]  }
  0x79   :  { %1672 = vmatprep.subr.bf16.mxu1 %v5220_v63  ;;  %v5308_v63 = vld [vmem:[%s7600_s1 + $0x5a0] ss:$16 sps:$4 sm:$0xff]  }
  0x7b   :  { %1517 = vmatpush1.bf16.msra.mxu0 %v5215_v0  ;;  %v5311_v0 = vld [vmem:[%s7600_s1 + $0x4a8] ss:$16 sps:$4 sm:$0xff]  }
  0x7c   :  { %1673 = vmatpush1.bf16.msra.mxu1 %v5218_v2  ;;  %1518 = vmatprep.subr.bf16.mxu0 %v5223_v3  ;;  %v5316_v2 = vld [vmem:[%s7600_s1 + $0x5c4] ss:$16 sps:$4 sm:$0xff]   ;;  %v5319_v3 = vld [vmem:[%s7600_s1 + $0x4cc] ss:$16 sps:$4 sm:$0xff]  }
  0x7d   :  { %1674 = vmatprep.subr.bf16.mxu1 %v5226_v4  ;;  %v5314_v4 = vld [vmem:[%s7600_s1 + $0x5c0] ss:$16 sps:$4 sm:$0xff]  }
  0x7f   :  { %1519 = vmatpush1.bf16.msra.mxu0 %v5221_v5  ;;  %v5317_v5 = vld [vmem:[%s7600_s1 + $0x4c8] ss:$16 sps:$4 sm:$0xff]  }
  0x80   :  { %1675 = vmatpush1.bf16.msra.mxu1 %v5224_v6  ;;  %1531 = vmatprep.subr.bf16.mxu0 %v5232_v7  ;;  %v5322_v6 = vld [vmem:[%s7600_s1 + $0x5e4] ss:$16 sps:$4 sm:$0xff]   ;;  %v5325_v7 = vld [vmem:[%s7600_s1 + $0x4ec] ss:$16 sps:$4 sm:$0xff]  }
  0x81   :  { %1676 = vmatprep.subr.bf16.mxu1 %v5235_v8  ;;  %v5320_v8 = vld [vmem:[%s7600_s1 + $0x5e0] ss:$16 sps:$4 sm:$0xff]  }
  0x82   :  { %1521 = vmatmul.mubr.bf16.vlgmr.msra.gmra.mrb[0].mxu0 %v6300_v9 }
  0x83   :  { %1532 = vmatpush1.bf16.msra.mxu0 %v5230_v10  ;;  %1563 = vmatprep.mubr.bf16.mxu0 %v6327_v17  ;;  %v5331_v10 = vld [vmem:[%s7600_s1 + $0x50c] ss:$16 sps:$4 sm:$0xff]  }
  0x84   :  { %1677 = vmatpush1.bf16.msra.mxu1 %v5233_v11  ;;  %1533 = vmatprep.subr.bf16.mxu0 %v5238_v12  ;;  %v5377_v11 = vld [vmem:[%s7602_s3 + $0x40] sm:$0xff]   ;;  %v5326_v12 = vld [vmem:[%s7601_s0 + $0x10] ss:$28 sps:$4 sm:$0xff]  }
  0x85   :  { %1678 = vmatprep.subr.bf16.mxu1 %v5241_v13  ;;  %v5329_v13 = vld [vmem:[%s7600_s1 + $0x508] ss:$16 sps:$4 sm:$0xff]  }
  0x87   :  { %1534 = vmatpush1.bf16.msra.mxu0 %v5236_v14  ;;  %v5378_v14 = vld [vmem:[%s7602_s3] sm:$0xff]  }
  0x88   :  { %1679 = vmatpush1.bf16.msra.mxu1 %v5239_v15  ;;  %1535 = vmatprep.subr.bf16.mxu0 %v5244_v16  ;;  %v5334_v15 = vld [vmem:[%s7600_s1 + $0x52c] ss:$16 sps:$4 sm:$0xff]  }
  0x89   :  { %1680 = vmatprep.subr.bf16.mxu1 %v5247_v18  ;;  %v5379_v16 = vld [vmem:[%s7602_s3 + $0x48] sm:$0xff]  }
  0x8a   :  { %v5380_v18 = vld [vmem:[%s7602_s3 + $0x8] sm:$0xff]  }
  0x8b   :  { %1536 = vmatpush1.bf16.msra.mxu0 %v5242_v19  ;;  %v5337_v19 = vld [vmem:[%s7600_s1 + $0x54c] ss:$16 sps:$4 sm:$0xff]  }
  0x8c   :  { %1681 = vmatpush1.bf16.msra.mxu1 %v5245_v20  ;;  %1537 = vmatprep.subr.bf16.mxu0 %v5250_v21  ;;  %v5381_v20 = vld [vmem:[%s7602_s3 + $0x50] sm:$0xff]   ;;  %v5335_v21 = vld [vmem:[%s7600_s1 + $0x548] ss:$16 sps:$4 sm:$0xff]  }
  0x8d   :  { %1682 = vmatprep.subr.bf16.mxu1 %v5253_v22  ;;  %v5382_v22 = vld [vmem:[%s7602_s3 + $0x10] sm:$0xff]  }
  0x8f   :  { %1538 = vmatpush1.bf16.msra.mxu0 %v5248_v23  ;;  %v5340_v23 = vld [vmem:[%s7600_s1 + $0x56c] ss:$16 sps:$4 sm:$0xff]  }
  0x90   :  { %1683 = vmatpush1.bf16.msra.mxu1 %v5251_v24  ;;  %1539 = vmatprep.subr.bf16.mxu0 %v5256_v25  ;;  %v5383_v24 = vld [vmem:[%s7602_s3 + $0x58] sm:$0xff]  }
  0x91   :  { %1684 = vmatprep.subr.bf16.mxu1 %v5259_v26  ;;  %v5338_v25 = vld [vmem:[%s7600_s1 + $0x568] ss:$16 sps:$4 sm:$0xff]  }
  0x92   :  { %v5384_v26 = vld [vmem:[%s7602_s3 + $0x18] sm:$0xff]  }
  0x93   :  { %1540 = vmatpush1.bf16.msra.mxu0 %v5254_v27  ;;  %v5343_v27 = vld [vmem:[%s7600_s1 + $0x58c] ss:$16 sps:$4 sm:$0xff]  }
  0x94   :  { %1685 = vmatpush1.bf16.msra.mxu1 %v5257_v28  ;;  %1541 = vmatprep.subr.bf16.mxu0 %v5262_v29  ;;  %v5385_v28 = vld [vmem:[%s7602_s3 + $0x60] sm:$0xff]   ;;  %v5341_v29 = vld [vmem:[%s7600_s1 + $0x588] ss:$16 sps:$4 sm:$0xff]  }
  0x95   :  { %1686 = vmatprep.subr.bf16.mxu1 %v5265_v30  ;;  %v5386_v30 = vld [vmem:[%s7602_s3 + $0x20] sm:$0xff]  }
  0x97   :  { %1542 = vmatpush1.bf16.msra.mxu0 %v5260_v31  ;;  %v5346_v31 = vld [vmem:[%s7600_s1 + $0x5ac] ss:$16 sps:$4 sm:$0xff]  }
  0x98   :  { %1687 = vmatpush1.bf16.msra.mxu1 %v5263_v32  ;;  %1543 = vmatprep.subr.bf16.mxu0 %v5268_v33  ;;  %v5344_v32 = vld [vmem:[%s7600_s1 + $0x5a8] ss:$16 sps:$4 sm:$0xff]   ;;  %v5349_v33 = vld [vmem:[%s7600_s1 + $0x5cc] ss:$16 sps:$4 sm:$0xff]  }
  0x99   :  { %1688 = vmatprep.subr.bf16.mxu1 %v5271_v34  ;;  %v5347_v34 = vld [vmem:[%s7600_s1 + $0x5c8] ss:$16 sps:$4 sm:$0xff]  }
  0x9b   :  { %1544 = vmatpush1.bf16.msra.mxu0 %v5266_v35  ;;  %v5352_v35 = vld [vmem:[%s7600_s1 + $0x5ec] ss:$16 sps:$4 sm:$0xff]  }
  0x9c   :  { %1689 = vmatpush1.bf16.msra.mxu1 %v5269_v36  ;;  %1545 = vmatprep.subr.bf16.mxu0 %v5274_v37  ;;  %v5350_v36 = vld [vmem:[%s7600_s1 + $0x5e8] ss:$16 sps:$4 sm:$0xff]   ;;  %v5355_v37 = vld [vmem:[%s7600_s1 + $0x60c] ss:$16 sps:$4 sm:$0xff]  }
  0x9d   :  { %1690 = vmatprep.subr.bf16.mxu1 %v5277_v38  ;;  %v5353_v38 = vld [vmem:[%s7600_s1 + $0x608] ss:$16 sps:$4 sm:$0xff]  }
  0x9f   :  { %1546 = vmatpush1.bf16.msra.mxu0 %v5272_v39  ;;  %v5358_v39 = vld [vmem:[%s7600_s1 + $0x62c] ss:$16 sps:$4 sm:$0xff]  }
  0xa0   :  { %1691 = vmatpush1.bf16.msra.mxu1 %v5275_v40  ;;  %1547 = vmatprep.subr.bf16.mxu0 %v5280_v41  ;;  %v5356_v40 = vld [vmem:[%s7600_s1 + $0x628] ss:$16 sps:$4 sm:$0xff]   ;;  %v5361_v41 = vld [vmem:[%s7600_s1 + $0x64c] ss:$16 sps:$4 sm:$0xff]  }
  0xa1   :  { %1703 = vmatprep.subr.bf16.mxu1 %v5283_v42  ;;  %v5359_v42 = vld [vmem:[%s7600_s1 + $0x648] ss:$16 sps:$4 sm:$0xff]  }
  0xa3   :  { %1693 = vmatmul.mubr.bf16.vlgmr.msra.gmra.mrb[4].mxu1 %v6300_v9  ;;  %1548 = vmatpush1.bf16.msra.mxu0 %v5278_v43  ;;  %v5323_v9 = vld [vmem:[%s7600_s1 + $0x4e8] ss:$16 sps:$4 sm:$0xff]   ;;  %v5364_v43 = vld [vmem:[%s7600_s1 + $0x66c] ss:$16 sps:$4 sm:$0xff]  }
  0xa4   :  { %1704 = vmatpush1.bf16.msra.mxu1 %v5281_v44  ;;  %1549 = vmatprep.subr.bf16.mxu0 %v5286_v45  ;;  %v5362_v44 = vld [vmem:[%s7600_s1 + $0x668] ss:$16 sps:$4 sm:$0xff]   ;;  %v5367_v45 = vld [vmem:[%s7600_s1 + $0x68c] ss:$16 sps:$4 sm:$0xff]  }
  0xa5   :  { %1705 = vmatprep.subr.bf16.mxu1 %v5289_v46  ;;  %1735 = vmatprep.mubr.bf16.mxu1 %v6327_v17  ;;  %v5332_v17 = vld [vmem:[%s7600_s1 + $0x528] ss:$16 sps:$4 sm:$0xff]  }
  0xa6   :  { %v5365_v46 = vld [vmem:[%s7600_s1 + $0x688] ss:$16 sps:$4 sm:$0xff]  }
  0xa7   :  { %1550 = vmatpush1.bf16.msra.mxu0 %v5284_v47  ;;  %v5370_v47 = vld [vmem:[%s7600_s1 + $0x6ac] ss:$16 sps:$4 sm:$0xff]  }
  0xa8   :  { %1706 = vmatpush1.bf16.msra.mxu1 %v5287_v48  ;;  %1551 = vmatprep.subr.bf16.mxu0 %v5292_v49  ;;  %v5368_v48 = vld [vmem:[%s7600_s1 + $0x6a8] ss:$16 sps:$4 sm:$0xff]   ;;  %v5373_v49 = vld [vmem:[%s7600_s1 + $0x6cc] ss:$16 sps:$4 sm:$0xff]  }
  0xa9   :  { %1707 = vmatprep.subr.bf16.mxu1 %v5295_v50 }
  0xab   :  { %1552 = vmatpush1.bf16.msra.mxu0 %v5290_v51 }
  0xac   :  { %1708 = vmatpush1.bf16.msra.mxu1 %v5293_v52  ;;  %1553 = vmatprep.subr.bf16.mxu0 %v5298_v53  ;;  %v5371_v53 = vld [vmem:[%s7600_s1 + $0x6c8] ss:$16 sps:$4 sm:$0xff]  }
  0xad   :  { %1709 = vmatprep.subr.bf16.mxu1 %v5301_v54 }
  0xaf   :  { %1554 = vmatpush1.bf16.msra.mxu0 %v5296_v55  ;;  %v5376_v55 = vld [vmem:[%s7600_s1 + $0x6ec] ss:$16 sps:$4 sm:$0xff]  }
  0xb0   :  { %1710 = vmatpush1.bf16.msra.mxu1 %v5299_v56  ;;  %1555 = vmatprep.subr.bf16.mxu0 %v5304_v57  ;;  %v5374_v56 = vld [vmem:[%s7600_s1 + $0x6e8] ss:$16 sps:$4 sm:$0xff]  }
  0xb1   :  { %1711 = vmatprep.subr.bf16.mxu1 %v5307_v58  ;;  %v5833_v57 = vld [vmem:[%s7601_s0 + $0x18] ss:$28 sps:$4 sm:$0xff]   ;;  %v5387_v58 = vld [vmem:[%s7602_s3 + $0x68] sm:$0xff]  }
  0xb3   :  { %1556 = vmatpush1.bf16.msra.mxu0 %v5302_v59  ;;  %v5388_v59 = vld [vmem:[%s7602_s3 + $0x28] sm:$0xff]  }
  0xb4   :  { %1712 = vmatpush1.bf16.msra.mxu1 %v5305_v60  ;;  %1557 = vmatprep.subr.bf16.mxu0 %v5310_v61  ;;  %v5389_v60 = vld [vmem:[%s7602_s3 + $0x70] sm:$0xff]  }
  0xb5   :  { %1713 = vmatprep.subr.bf16.mxu1 %v5313_v62  ;;  %v5390_v61 = vld [vmem:[%s7602_s3 + $0x30] sm:$0xff]   ;;  %v5391_v62 = vld [vmem:[%s7602_s3 + $0x78] sm:$0xff]  }
  0xb7   :  { %1558 = vmatpush1.bf16.msra.mxu0 %v5308_v63  ;;  %v5392_v63 = vld [vmem:[%s7602_s3 + $0x38] sm:$0xff]  }
  0xb8   :  { %1714 = vmatpush1.bf16.msra.mxu1 %v5311_v0  ;;  %1559 = vmatprep.subr.bf16.mxu0 %v5316_v2  ;;  %v5393_v0 = vld [vmem:[%s7602_s3 + $0xc0] sm:$0xff]  }
  0xb9   :  { %1715 = vmatprep.subr.bf16.mxu1 %v5319_v3  ;;  %v5394_v2 = vld [vmem:[%s7602_s3 + $0x80] sm:$0xff]   ;;  %v5395_v3 = vld [vmem:[%s7602_s3 + $0xc8] sm:$0xff]  }
  0xbb   :  { %1560 = vmatpush1.bf16.msra.mxu0 %v5314_v4  ;;  %v5396_v4 = vld [vmem:[%s7602_s3 + $0x88] sm:$0xff]  }
  0xbc   :  { %1716 = vmatpush1.bf16.msra.mxu1 %v5317_v5  ;;  %1561 = vmatprep.subr.bf16.mxu0 %v5322_v6  ;;  %v5397_v5 = vld [vmem:[%s7602_s3 + $0xd0] sm:$0xff]  }
  0xbd   :  { %1717 = vmatprep.subr.bf16.mxu1 %v5325_v7  ;;  %v5398_v6 = vld [vmem:[%s7602_s3 + $0x90] sm:$0xff]   ;;  %v5399_v7 = vld [vmem:[%s7602_s3 + $0xd8] sm:$0xff]  }
  0xbf   :  { %1562 = vmatpush1.bf16.msra.mxu0 %v5320_v8  ;;  %v5400_v8 = vld [vmem:[%s7602_s3 + $0x98] sm:$0xff]  }
  0xc0   :  { %1718 = vmatpush1.bf16.msra.mxu1 %v5323_v9  ;;  %4886 = vmatprep.subr.bf16.mxu0 %v5377_v11  ;;  %v5401_v9 = vld [vmem:[%s7602_s3 + $0xe0] sm:$0xff]   ;;  %v5403_v11 = vld [vmem:[%s7602_s3 + $0xe8] sm:$0xff]  }
  0xc1   :  { %1719 = vmatprep.subr.bf16.mxu1 %v5331_v10  ;;  %v5402_v10 = vld [vmem:[%s7602_s3 + $0xa0] sm:$0xff]  }
  0xc2   :  { %1564 = vmatmul.mubr.bf16.vlgmr.msra.gmra.mrb[0].mxu0 %v5326_v12 }
  0xc3   :  { %4887 = vmatpush3.bf16.msra.mxu0 %v5378_v14  ;;  %v5406_v14 = vld [vmem:[%s7602_s3 + $0xb0] sm:$0xff]  }
  0xc4   :  { %1720 = vmatpush1.bf16.msra.mxu1 %v5329_v13  ;;  %4888 = vmatprep.subr.bf16.mxu0 %v5379_v16  ;;  %v5405_v13 = vld [vmem:[%s7602_s3 + $0xf0] sm:$0xff]   ;;  %v5408_v16 = vld [vmem:[%s7602_s3 + $0xb8] sm:$0xff]  }
  0xc5   :  { %1721 = vmatprep.subr.bf16.mxu1 %v5334_v15  ;;  %v5407_v15 = vld [vmem:[%s7602_s3 + $0xf8] sm:$0xff]  }
  0xc7   :  { %4889 = vmatpush3.bf16.msra.mxu0 %v5380_v18 }
  0xc8   :  { %1722 = vmatpush1.bf16.msra.mxu1 %v5332_v17  ;;  %4890 = vmatprep.subr.bf16.mxu0 %v5381_v20  ;;  %v269_v17 = vlaneseq  ;;  %v267_v20 = vld [vmem:[%s7603_s2] sm:$0xf] }
  0xc9   :  { %1723 = vmatprep.subr.bf16.mxu1 %v5337_v19 }
  0xca   :  { %v6704_v18 = vshrl.u32 %v269_v17, 7  ;;  %v5444_v17 = vld [vmem:[%s7604_s5 + $0xac] ss:$16 sps:$4 sm:$0xff]  }
  0xcb   :  { %4891 = vmatpush3.bf16.msra.mxu0 %v5382_v22 }
  0xcc   :  { %1724 = vmatpush1.bf16.msra.mxu1 %v5335_v21  ;;  %4892 = vmatprep.subr.bf16.mxu0 %v5383_v24  ;;  %v6707_v19 = vsub.s32 0, %v6704_v18  ;;  %v6713_v21 = vsub.s32 1, %v6704_v18 }
  0xcd   :  { %1725 = vmatprep.subr.bf16.mxu1 %v5340_v23 }
  0xce   :  { %v272_v22 = vrot.slane %v267_v20, %v6707_v19  ;;  %v276_v23 = vrot.slane %v267_v20, %v6713_v21 }
  0xcf   :  { %4893 = vmatpush3.bf16.msra.mxu0 %v5384_v26 }
  0xd0   :  { %1726 = vmatpush1.bf16.msra.mxu1 %v5338_v25  ;;  %4894 = vmatprep.subr.bf16.mxu0 %v5385_v28 }
  0xd1   :  { %1727 = vmatprep.subr.bf16.mxu1 %v5343_v27 }
  0xd3   :  { %4895 = vmatpush3.bf16.msra.mxu0 %v5386_v30 }
  0xd4   :  { %1728 = vmatpush1.bf16.msra.mxu1 %v5341_v29  ;;  %4896 = vmatprep.subr.bf16.mxu0 %v5387_v58 }
  0xd5   :  { %1729 = vmatprep.subr.bf16.mxu1 %v5346_v31 }
  0xd7   :  { %4897 = vmatpush3.bf16.msra.mxu0 %v5388_v59 }
  0xd8   :  { %1730 = vmatpush1.bf16.msra.mxu1 %v5344_v32  ;;  %4898 = vmatprep.subr.bf16.mxu0 %v5389_v60  ;;  %v5409_v60 = vld [vmem:[%s7604_s5] ss:$16 sps:$4 sm:$0xff]  }
  0xd9   :  { %1731 = vmatprep.subr.bf16.mxu1 %v5349_v33 }
  0xdb   :  { %4899 = vmatpush3.bf16.msra.mxu0 %v5390_v61  ;;  %v5411_v61 = vld [vmem:[%s7604_s5 + $0x4] ss:$16 sps:$4 sm:$0xff]  }
  0xdc   :  { %1732 = vmatpush1.bf16.msra.mxu1 %v5347_v34  ;;  %4900 = vmatprep.subr.bf16.mxu0 %v5391_v62  ;;  %v5412_v62 = vld [vmem:[%s7604_s5 + $0x8] ss:$16 sps:$4 sm:$0xff]  }
  0xdd   :  { %1733 = vmatprep.subr.bf16.mxu1 %v5352_v35 }
  0xdf   :  { %4901 = vmatpush3.bf16.msra.mxu0 %v5392_v63  ;;  %v5414_v63 = vld [vmem:[%s7604_s5 + $0xc] ss:$16 sps:$4 sm:$0xff]  }
  0xe0   :  { %1734 = vmatpush1.bf16.msra.mxu1 %v5350_v36  ;;  %2363 = vmatprep.subr.bf16.mxu0 %v5411_v61  ;;  %v5469_v61 = vld [vmem:[%s7605_s7 + $0x70] ss:$28 sps:$4 sm:$0xff]  }
  0xe1   :  { %1746 = vmatprep.subr.bf16.mxu1 %v5355_v37 }
  0xe3   :  { %1736 = vmatmul.mubr.bf16.vlgmr.msra.gmra.mrb[4].mxu1 %v5326_v12  ;;  %v5404_v12 = vld [vmem:[%s7602_s3 + $0xa8] sm:$0xff]  }
  0xe4   :  { %1747 = vmatpush1.bf16.msra.mxu1 %v5353_v38  ;;  %1778 = vmatprep.mubr.bf16.mxu1 %v5834_v1 }
  0xe5   :  { %1748 = vmatprep.subr.bf16.mxu1 %v5358_v39 }
  0xe8   :  { %1749 = vmatpush1.bf16.msra.mxu1 %v5356_v40 }
  0xe9   :  { %1750 = vmatprep.subr.bf16.mxu1 %v5361_v41 }
  0xec   :  { %1751 = vmatpush1.bf16.msra.mxu1 %v5359_v42  ;;  %v6723_v42 = vsub.s32 2, %v6704_v18 }
  0xed   :  { %1752 = vmatprep.subr.bf16.mxu1 %v5364_v43  ;;  %v6726_v43 = vsub.s32 3, %v6704_v18 }
  0xf0   :  { %1753 = vmatpush1.bf16.msra.mxu1 %v5362_v44  ;;  %v280_v44 = vrot.slane %v267_v20, %v6723_v42 }
  0xf1   :  { %1754 = vmatprep.subr.bf16.mxu1 %v5367_v45  ;;  %v284_v45 = vrot.slane %v267_v20, %v6726_v43  ;;  %v5439_v20 = vld [vmem:[%s7604_s5 + $0xa0] ss:$16 sps:$4 sm:$0xff]  }
  0xf4   :  { %1755 = vmatpush1.bf16.msra.mxu1 %v5365_v46 }
  0xf5   :  { %1756 = vmatprep.subr.bf16.mxu1 %v5370_v47 }
  0xf6   :  { %v6618_v50 = vpop.f32.mrb[0].mxu1 }
  0xf7   :  { %v6620_v51 = vpop.f32.mrb[1].mxu1 }
  0xf8   :  { %v6622_v52 = vpop.f32.mrb[2].mxu1  ;;  %1757 = vmatpush1.bf16.msra.mxu1 %v5368_v48 }
  0xf9   :  { %v6627_v54 = vpop.f32.mrb[3].mxu1  ;;  %1758 = vmatprep.subr.bf16.mxu1 %v5373_v49 }
  0xfc   :  { %1759 = vmatpush1.bf16.msra.mxu1 %v5371_v53 }
  0xfd   :  { %1760 = vmatprep.subr.bf16.mxu1 %v5376_v55 }
 0x100   :  { %1761 = vmatpush1.bf16.msra.mxu1 %v5374_v56 }
 0x101   :  { %4908 = vmatprep.subr.bf16.mxu1 %v5393_v0  ;;  %v5417_v0 = vld [vmem:[%s7604_s5 + $0x24] ss:$16 sps:$4 sm:$0xff]  }
 0x103   :  { %1779 = vmatmul.mubr.bf16.vlgmr.msra.gmra.mrb[4].mxu1 %v5833_v57 }
 0x104   :  { %4909 = vmatpush3.bf16.msra.mxu1 %v5394_v2  ;;  %v5418_v2 = vld [vmem:[%s7604_s5 + $0x28] ss:$16 sps:$4 sm:$0xff]  }
 0x105   :  { %4910 = vmatprep.subr.bf16.mxu1 %v5395_v3  ;;  %v5420_v3 = vld [vmem:[%s7604_s5 + $0x2c] ss:$16 sps:$4 sm:$0xff]  }
 0x108   :  { %4911 = vmatpush3.bf16.msra.mxu1 %v5396_v4  ;;  %v5423_v4 = vld [vmem:[%s7604_s5 + $0x44] ss:$16 sps:$4 sm:$0xff]  }
 0x109   :  { %4912 = vmatprep.subr.bf16.mxu1 %v5397_v5  ;;  %v5421_v5 = vld [vmem:[%s7604_s5 + $0x40] ss:$16 sps:$4 sm:$0xff]  }
 0x10c   :  { %4913 = vmatpush3.bf16.msra.mxu1 %v5398_v6  ;;  %v5426_v6 = vld [vmem:[%s7604_s5 + $0x4c] ss:$16 sps:$4 sm:$0xff]  }
 0x10d   :  { %4914 = vmatprep.subr.bf16.mxu1 %v5399_v7  ;;  %v5424_v7 = vld [vmem:[%s7604_s5 + $0x48] ss:$16 sps:$4 sm:$0xff]  }
 0x110   :  { %4915 = vmatpush3.bf16.msra.mxu1 %v5400_v8  ;;  %v5429_v8 = vld [vmem:[%s7604_s5 + $0x64] ss:$16 sps:$4 sm:$0xff]  }
 0x111   :  { %4916 = vmatprep.subr.bf16.mxu1 %v5401_v9  ;;  %v5432_v9 = vld [vmem:[%s7604_s5 + $0x6c] ss:$16 sps:$4 sm:$0xff]  }
 0x114   :  { %4917 = vmatpush3.bf16.msra.mxu1 %v5402_v10  ;;  %v5427_v10 = vld [vmem:[%s7604_s5 + $0x60] ss:$16 sps:$4 sm:$0xff]  }
 0x115   :  { %4918 = vmatprep.subr.bf16.mxu1 %v5403_v11  ;;  %v5430_v11 = vld [vmem:[%s7604_s5 + $0x68] ss:$16 sps:$4 sm:$0xff]  }
 0x118   :  { %4919 = vmatpush3.bf16.msra.mxu1 %v5404_v12  ;;  %v5435_v12 = vld [vmem:[%s7604_s5 + $0x84] ss:$16 sps:$4 sm:$0xff]  }
 0x119   :  { %4920 = vmatprep.subr.bf16.mxu1 %v5405_v13  ;;  %v5433_v13 = vld [vmem:[%s7604_s5 + $0x80] ss:$16 sps:$4 sm:$0xff]  }
 0x11c   :  { %4921 = vmatpush3.bf16.msra.mxu1 %v5406_v14  ;;  %v5438_v14 = vld [vmem:[%s7604_s5 + $0x8c] ss:$16 sps:$4 sm:$0xff]  }
 0x11d   :  { %4922 = vmatprep.subr.bf16.mxu1 %v5407_v15  ;;  %v5436_v15 = vld [vmem:[%s7604_s5 + $0x88] ss:$16 sps:$4 sm:$0xff]  }
 0x120   :  { %4923 = vmatpush3.bf16.msra.mxu1 %v5408_v16  ;;  %v5441_v16 = vld [vmem:[%s7604_s5 + $0xa4] ss:$16 sps:$4 sm:$0xff]  }
 0x121   :  { %2406 = vmatprep.subr.bf16.mxu1 %v5414_v63  ;;  %v5477_v63 = vld [vmem:[%s7605_s7 + $0xac] ss:$28 sps:$4 sm:$0xff]  }
 0x195   :  { %v1565_v24 = vpop.f32.mrb[0].mxu0 }
 0x196   :  { %v4974_v25 = vadd.f32 %v1565_v24, %v272_v22  ;;  %v1567_v26 = vpop.f32.mrb[1].mxu0  ;;  %v5450_v24 = vld [vmem:[%s7604_s5 + $0xcc] ss:$16 sps:$4 sm:$0xff]  }
 0x197   :  { %v4976_v27 = vadd.f32 %v1567_v26, %v276_v23  ;;  %v1569_v28 = vpop.f32.mrb[2].mxu0  ;;  %v5448_v26 = vld [vmem:[%s7604_s5 + $0xc8] ss:$16 sps:$4 sm:$0xff]  }
 0x198   :  { %v4975_v29 = vadd.f32 %v4974_v25, %v6618_v50  ;;  %v4978_v30 = vadd.f32 %v1569_v28, %v272_v22  ;;  %v1571_v31 = vpop.f32.mrb[3].mxu0  ;;  %v5442_v22 = vld [vmem:[%s7604_s5 + $0xa8] ss:$16 sps:$4 sm:$0xff]   ;;  %v5445_v25 = vld [vmem:[%s7604_s5 + $0xc0] ss:$16 sps:$4 sm:$0xff]  }
 0x199   :  { %v4977_v32 = vadd.f32 %v4976_v27, %v6620_v51  ;;  %v4980_v33 = vadd.f32 %v1571_v31, %v276_v23  ;;  %v5447_v23 = vld [vmem:[%s7604_s5 + $0xc4] ss:$16 sps:$4 sm:$0xff]   ;;  %v5456_v28 = vld [vmem:[%s7604_s5 + $0xec] ss:$16 sps:$4 sm:$0xff]  }
 0x19a   :  { %v4979_v34 = vadd.f32 %v4978_v30, %v6622_v52  ;;  %v1789_v36 = vmax.f32 %v4975_v29, 0.0  ;;  %v5453_v27 = vld [vmem:[%s7604_s5 + $0xe4] ss:$16 sps:$4 sm:$0xff]   ;;  %v5451_v29 = vld [vmem:[%s7604_s5 + $0xe0] ss:$16 sps:$4 sm:$0xff]  }
 0x19b   :  { %v4981_v35 = vadd.f32 %v4980_v33, %v6627_v54  ;;  %v1790_v38 = vmax.f32 %v4977_v32, 0.0  ;;  %v5454_v30 = vld [vmem:[%s7604_s5 + $0xe8] ss:$16 sps:$4 sm:$0xff]   ;;  %v5459_v31 = vld [vmem:[%s7605_s7 + $0x4] ss:$28 sps:$4 sm:$0xff]  }
 0x19c   :  { %v1793_v37 = vmax.f32 %v4979_v34, 0.0  ;;  %v5462_v32 = vld [vmem:[%s7605_s7 + $0xc] ss:$28 sps:$4 sm:$0xff]  }
 0x19d   :  { %v1794_v39 = vmax.f32 %v4981_v35, 0.0 }
 0x19e   :  { %v1797_v40 = vpack.c.bf16 %v1793_v37, %v1789_v36 }
 0x19f   :  { %v1798_v41 = vpack.c.bf16 %v1794_v39, %v1790_v38  ;;  %v4583_v39 = vld [vmem:[%s7606_s4] ss:$0 sm:$0xff] }
 0x1a1   :  { %2096 = vmatprep.mubr.bf16.mxu0 %v1798_v41 }
 0x1a2   :  { %2097 = vmatmul.mubr.bf16.vlgmr.msra.gmra.mrb[4].mxu0 %v1797_v40 }
 0x1a3   :  { %2395 = vmatprep.mubr.bf16.mxu0 %v5834_v1  ;;  %2364 = vmatpush1.bf16.msra.mxu0 %v5409_v60  ;;  %v5474_v60 = vld [vmem:[%s7605_s7 + $0x7c] ss:$28 sps:$4 sm:$0xff]  }
 0x1a4   :  { %2365 = vmatprep.subr.bf16.mxu0 %v5417_v0  ;;  %v5475_v0 = vld [vmem:[%s7605_s7 + $0xa8] ss:$28 sps:$4 sm:$0xff]  }
 0x1d6   :  { %v1780_v46 = vpop.f32.mrb[4].mxu1 }
 0x1d7   :  { %v4982_v47 = vadd.f32 %v1780_v46, %v280_v44  ;;  %v1782_v48 = vpop.f32.mrb[5].mxu1 }
 0x1d8   :  { %v4983_v49 = vadd.f32 %v1782_v48, %v284_v45  ;;  %v1784_v50 = vpop.f32.mrb[6].mxu1 }
 0x1d9   :  { %v4984_v51 = vadd.f32 %v1784_v50, %v280_v44  ;;  %v1786_v52 = vpop.f32.mrb[7].mxu1  ;;  %v1791_v54 = vmax.f32 %v4982_v47, 0.0 }
 0x1da   :  { %v4985_v53 = vadd.f32 %v1786_v52, %v284_v45  ;;  %v1792_v56 = vmax.f32 %v4983_v49, 0.0  ;;  %v5457_v52 = vld [vmem:[%s7605_s7] ss:$28 sps:$4 sm:$0xff]  }
 0x1db   :  { %v1795_v55 = vmax.f32 %v4984_v51, 0.0 }
 0x1dc   :  { %v1796_v57 = vmax.f32 %v4985_v53, 0.0  ;;  %v5460_v53 = vld [vmem:[%s7605_s7 + $0x8] ss:$28 sps:$4 sm:$0xff]  }
 0x1dd   :  { %v1799_v58 = vpack.c.bf16 %v1795_v55, %v1791_v54  ;;  %v5465_v55 = vld [vmem:[%s7605_s7 + $0x3c] ss:$28 sps:$4 sm:$0xff]  }
 0x1de   :  { %v1800_v59 = vpack.c.bf16 %v1796_v57, %v1792_v56  ;;  %v5468_v56 = vld [vmem:[%s7605_s7 + $0x44] ss:$28 sps:$4 sm:$0xff]   ;;  %v5463_v57 = vld [vmem:[%s7605_s7 + $0x38] ss:$28 sps:$4 sm:$0xff]  }
 0x1e0   :  { %2137 = vmatprep.mubr.bf16.mxu1 %v1800_v59  ;;  %v5471_v59 = vld [vmem:[%s7605_s7 + $0x74] ss:$28 sps:$4 sm:$0xff]  }
 0x1e1   :  { %2138 = vmatmul.mubr.bf16.vlgmr.msra.gmra.mrb[8].mxu1 %v1799_v58  ;;  %v5466_v58 = vld [vmem:[%s7605_s7 + $0x40] ss:$28 sps:$4 sm:$0xff]  }
 0x1e2   :  { %2438 = vmatprep.mubr.bf16.mxu1 %v5834_v1  ;;  %v5415_v1 = vld [vmem:[%s7604_s5 + $0x20] ss:$16 sps:$4 sm:$0xff]   ;;  %2407 = vmatpush1.bf16.msra.mxu1 %v5412_v62  ;;  %v5472_v62 = vld [vmem:[%s7605_s7 + $0x78] ss:$28 sps:$4 sm:$0xff]  }
 0x1e3   :  { %2408 = vmatprep.subr.bf16.mxu1 %v5420_v3  ;;  %2366 = vmatpush1.bf16.msra.mxu0 %v5415_v1  ;;  %v5480_v1 = vld [vmem:[%s7605_s7 + $0xb4] ss:$28 sps:$4 sm:$0xff]   ;;  %v5483_v3 = vld [vmem:[%s7605_s7 + $0xe4] ss:$28 sps:$4 sm:$0xff]  }
 0x1e4   :  { %2367 = vmatprep.subr.bf16.mxu0 %v5423_v4  ;;  %v5486_v4 = vld [vmem:[%s7605_s7 + $0xec] ss:$28 sps:$4 sm:$0xff]  }
 0x1e6   :  { %2409 = vmatpush1.bf16.msra.mxu1 %v5418_v2  ;;  %v5478_v2 = vld [vmem:[%s7605_s7 + $0xb0] ss:$28 sps:$4 sm:$0xff]  }
 0x1e7   :  { %2410 = vmatprep.subr.bf16.mxu1 %v5426_v6  ;;  %2368 = vmatpush1.bf16.msra.mxu0 %v5421_v5  ;;  %v5481_v5 = vld [vmem:[%s7605_s7 + $0xe0] ss:$28 sps:$4 sm:$0xff]   ;;  %v5484_v6 = vld [vmem:[%s7605_s7 + $0xe8] ss:$28 sps:$4 sm:$0xff]  }
 0x1e8   :  { %2369 = vmatprep.subr.bf16.mxu0 %v5429_v8  ;;  %v5492_v8 = vld [vmem:[%s7605_s7 + $0x124] ss:$28 sps:$4 sm:$0xff]  }
 0x1ea   :  { %2411 = vmatpush1.bf16.msra.mxu1 %v5424_v7  ;;  %v5489_v7 = vld [vmem:[%s7605_s7 + $0x11c] ss:$28 sps:$4 sm:$0xff]  }
 0x1eb   :  { %2412 = vmatprep.subr.bf16.mxu1 %v5432_v9  ;;  %2370 = vmatpush1.bf16.msra.mxu0 %v5427_v10  ;;  %v5487_v9 = vld [vmem:[%s7605_s7 + $0x118] ss:$28 sps:$4 sm:$0xff]   ;;  %v5490_v10 = vld [vmem:[%s7605_s7 + $0x120] ss:$28 sps:$4 sm:$0xff]  }
 0x1ec   :  { %2371 = vmatprep.subr.bf16.mxu0 %v5435_v12  ;;  %v5498_v12 = vld [vmem:[%s7605_s7 + $0x15c] ss:$28 sps:$4 sm:$0xff]  }
 0x1ee   :  { %2413 = vmatpush1.bf16.msra.mxu1 %v5430_v11  ;;  %v5495_v11 = vld [vmem:[%s7605_s7 + $0x154] ss:$28 sps:$4 sm:$0xff]  }
 0x1ef   :  { %2414 = vmatprep.subr.bf16.mxu1 %v5438_v14  ;;  %2372 = vmatpush1.bf16.msra.mxu0 %v5433_v13  ;;  %v5493_v13 = vld [vmem:[%s7605_s7 + $0x150] ss:$28 sps:$4 sm:$0xff]   ;;  %v5496_v14 = vld [vmem:[%s7605_s7 + $0x158] ss:$28 sps:$4 sm:$0xff]  }
 0x1f0   :  { %2373 = vmatprep.subr.bf16.mxu0 %v5441_v16  ;;  %v5504_v16 = vld [vmem:[%s7605_s7 + $0x194] ss:$28 sps:$4 sm:$0xff]  }
 0x1f2   :  { %2415 = vmatpush1.bf16.msra.mxu1 %v5436_v15  ;;  %v5501_v15 = vld [vmem:[%s7605_s7 + $0x18c] ss:$28 sps:$4 sm:$0xff]  }
 0x1f3   :  { %2416 = vmatprep.subr.bf16.mxu1 %v5444_v17  ;;  %2374 = vmatpush1.bf16.msra.mxu0 %v5439_v20  ;;  %v5499_v17 = vld [vmem:[%s7605_s7 + $0x188] ss:$28 sps:$4 sm:$0xff]   ;;  %v5502_v20 = vld [vmem:[%s7605_s7 + $0x190] ss:$28 sps:$4 sm:$0xff]  }
 0x1f4   :  { %2375 = vmatprep.subr.bf16.mxu0 %v5447_v23  ;;  %v5510_v23 = vld [vmem:[%s7605_s7 + $0x1cc] ss:$28 sps:$4 sm:$0xff]  }
 0x1f6   :  { %2417 = vmatpush1.bf16.msra.mxu1 %v5442_v22  ;;  %v5507_v22 = vld [vmem:[%s7605_s7 + $0x1c4] ss:$28 sps:$4 sm:$0xff]  }
 0x1f7   :  { %2418 = vmatprep.subr.bf16.mxu1 %v5450_v24  ;;  %2376 = vmatpush1.bf16.msra.mxu0 %v5445_v25  ;;  %v5505_v24 = vld [vmem:[%s7605_s7 + $0x1c0] ss:$28 sps:$4 sm:$0xff]   ;;  %v5508_v25 = vld [vmem:[%s7605_s7 + $0x1c8] ss:$28 sps:$4 sm:$0xff]  }
 0x1f8   :  { %2377 = vmatprep.subr.bf16.mxu0 %v5453_v27  ;;  %v5516_v27 = vld [vmem:[%s7605_s7 + $0x204] ss:$28 sps:$4 sm:$0xff]  }
 0x1fa   :  { %2419 = vmatpush1.bf16.msra.mxu1 %v5448_v26  ;;  %v5513_v26 = vld [vmem:[%s7605_s7 + $0x1fc] ss:$28 sps:$4 sm:$0xff]  }
 0x1fb   :  { %2420 = vmatprep.subr.bf16.mxu1 %v5456_v28  ;;  %2378 = vmatpush1.bf16.msra.mxu0 %v5451_v29  ;;  %v5511_v28 = vld [vmem:[%s7605_s7 + $0x1f8] ss:$28 sps:$4 sm:$0xff]   ;;  %v5514_v29 = vld [vmem:[%s7605_s7 + $0x200] ss:$28 sps:$4 sm:$0xff]  }
 0x1fc   :  { %3906 = vmatprep.subr.bf16.mxu0 %v5459_v31  ;;  %v5522_v31 = vld [vmem:[%s7605_s7 + $0x23c] ss:$28 sps:$4 sm:$0xff]  }
 0x1fe   :  { %2421 = vmatpush1.bf16.msra.mxu1 %v5454_v30  ;;  %v5519_v30 = vld [vmem:[%s7605_s7 + $0x234] ss:$28 sps:$4 sm:$0xff]  }
 0x1ff   :  { %3992 = vmatprep.subr.bf16.mxu1 %v5462_v32  ;;  %v5517_v32 = vld [vmem:[%s7605_s7 + $0x230] ss:$28 sps:$4 sm:$0xff]  }
 0x275   :  { %v4902_v33 = vpop.f32.mrb[4].mxu0 }
 0x276   :  { %v4903_v34 = vpop.f32.mrb[5].mxu0 }
 0x277   :  { %v4904_v35 = vadd.f32 %v4903_v34, %v4902_v33  ;;  %v4905_v36 = vpop.f32.mrb[6].mxu0  ;;  %v5520_v33 = vld [vmem:[%s7605_s7 + $0x238] ss:$28 sps:$4 sm:$0xff]   ;;  %v5525_v34 = vld [vmem:[%s7605_s7 + $0x26c] ss:$28 sps:$4 sm:$0xff]  }
 0x278   :  { %v4906_v37 = vpop.f32.mrb[7].mxu0 }
 0x279   :  { %v4907_v38 = vadd.f32 %v4906_v37, %v4905_v36  ;;  %v2099_v44 = vadd.f32 %v4904_v35, %v4583_v39  ;;  %v5528_v35 = vld [vmem:[%s7605_s7 + $0x274] ss:$28 sps:$4 sm:$0xff]   ;;  %v5523_v36 = vld [vmem:[%s7605_s7 + $0x268] ss:$28 sps:$4 sm:$0xff]  }
 0x27a   :  { %v5526_v37 = vld [vmem:[%s7605_s7 + $0x270] ss:$28 sps:$4 sm:$0xff]  }
 0x27b   :  { %v2102_v48 = vadd.f32 %v4907_v38, %v4583_v39  ;;  %v5531_v38 = vld [vmem:[%s7605_s7 + $0x2a4] ss:$28 sps:$4 sm:$0xff]   ;;  %v5534_v39 = vld [vmem:[%s7605_s7 + $0x2ac] ss:$28 sps:$4 sm:$0xff]  }
 0x2b4   :  { %v4924_v40 = vpop.f32.mrb[8].mxu1 }
 0x2b5   :  { %v4925_v41 = vpop.f32.mrb[9].mxu1 }
 0x2b6   :  { %v4926_v45 = vadd.f32 %v4925_v41, %v4924_v40  ;;  %v4927_v46 = vpop.f32.mrb[10].mxu1  ;;  %v5529_v40 = vld [vmem:[%s7605_s7 + $0x2a0] ss:$28 sps:$4 sm:$0xff]   ;;  %v5532_v41 = vld [vmem:[%s7605_s7 + $0x2a8] ss:$28 sps:$4 sm:$0xff]  }
 0x2b7   :  { %v4928_v47 = vpop.f32.mrb[11].mxu1 }
 0x2b8   :  { %v2140_v49 = vadd.f32 %v4926_v45, %v2099_v44  ;;  %v4929_v50 = vadd.f32 %v4928_v47, %v4927_v46  ;;  %v5537_v44 = vld [vmem:[%s7605_s7 + $0x2dc] ss:$28 sps:$4 sm:$0xff]   ;;  %v5540_v45 = vld [vmem:[%s7605_s7 + $0x2e4] ss:$28 sps:$4 sm:$0xff]  }
 0x2b9   :  { %v5535_v46 = vld [vmem:[%s7605_s7 + $0x2d8] ss:$28 sps:$4 sm:$0xff]   ;;  %v5538_v47 = vld [vmem:[%s7605_s7 + $0x2e0] ss:$28 sps:$4 sm:$0xff]  }
 0x2ba   :  { %2146 = vst [vmem:[%s7607_s10] sm:$0xff] %v2140_v49  ;;  %v2143_v51 = vadd.f32 %v4929_v50, %v2102_v48  ;;  %v5543_v48 = vld [vmem:[%s7605_s7 + $0x314] ss:$28 sps:$4 sm:$0xff]  }
 0x2bb   :  { %v5541_v50 = vld [vmem:[%s7605_s7 + $0x310] ss:$28 sps:$4 sm:$0xff]  }
 0x2bc   :  { %2147 = vst [vmem:[%s7607_s10 + $0x8] sm:$0xff] %v2143_v51  ;;  %v2148_v54 = vpack.c.bf16 %v2143_v51, %v2140_v49  ;;  %v5546_v49 = vld [vmem:[%s7605_s7 + $0x31c] ss:$28 sps:$4 sm:$0xff]  }
 0x2bd   :  { %v5544_v51 = vld [vmem:[%s7605_s7 + $0x318] ss:$28 sps:$4 sm:$0xff]  }
 0x2be   :  { %2396 = vmatmul.mubr.bf16.vlgmr.msra.gmra.mrb[8].mxu0 %v2148_v54  ;;  %2439 = vmatmul.mubr.bf16.vlgmr.msra.gmra.mrb[12].mxu1 %v2148_v54  ;;  %v5547_v54 = vld [vmem:[%s7605_s7 + $0x348] ss:$28 sps:$4 sm:$0xff]  }
 0x2bf   :  { %3907 = vmatpush1.bf16.msra.mxu0 %v5457_v52  ;;  %3993 = vmatpush1.bf16.msra.mxu1 %v5460_v53  ;;  %v5549_v52 = vld [vmem:[%s7605_s7 + $0x34c] ss:$28 sps:$4 sm:$0xff]   ;;  %v5552_v53 = vld [vmem:[%s7605_s7 + $0x354] ss:$28 sps:$4 sm:$0xff]  }
 0x2c0   :  { %3908 = vmatprep.subr.bf16.mxu0 %v5465_v55  ;;  %3994 = vmatprep.subr.bf16.mxu1 %v5468_v56  ;;  %v5550_v55 = vld [vmem:[%s7605_s7 + $0x350] ss:$28 sps:$4 sm:$0xff]   ;;  %v5555_v56 = vld [vmem:[%s7605_s7 + $0x384] ss:$28 sps:$4 sm:$0xff]  }
 0x2c3   :  { %3909 = vmatpush1.bf16.msra.mxu0 %v5463_v57  ;;  %3995 = vmatpush1.bf16.msra.mxu1 %v5466_v58  ;;  %v5558_v57 = vld [vmem:[%s7605_s7 + $0x38c] ss:$28 sps:$4 sm:$0xff]   ;;  %v2181_v58 = vld [vmem:[%s7608_s6] sm:$0xf] }
 0x2c4   :  { %3910 = vmatprep.subr.bf16.mxu0 %v5471_v59  ;;  %3996 = vmatprep.subr.bf16.mxu1 %v5474_v60  ;;  %v2186_v59 = vrot.slane %v2181_v58, %v6707_v19  ;;  %v2194_v60 = vrot.slane %v2181_v58, %v6723_v42 }
 0x2c7   :  { %3911 = vmatpush1.bf16.msra.mxu0 %v5469_v61  ;;  %3997 = vmatpush1.bf16.msra.mxu1 %v5472_v62  ;;  %v2190_v61 = vrot.slane %v2181_v58, %v6713_v21  ;;  %v2198_v62 = vrot.slane %v2181_v58, %v6726_v43  ;;  %v5597_v58 = vld [vmem:[%s7605_s7 + $0x50c] ss:$28 sps:$4 sm:$0xff]  }
 0x2c8   :  { %3912 = vmatprep.subr.bf16.mxu0 %v5477_v63  ;;  %3998 = vmatprep.subr.bf16.mxu1 %v5480_v1 }
 0x2cb   :  { %3913 = vmatpush1.bf16.msra.mxu0 %v5475_v0  ;;  %3999 = vmatpush1.bf16.msra.mxu1 %v5478_v2 }
 0x2cc   :  { %3914 = vmatprep.subr.bf16.mxu0 %v5483_v3  ;;  %4000 = vmatprep.subr.bf16.mxu1 %v5486_v4 }
 0x2cf   :  { %3915 = vmatpush1.bf16.msra.mxu0 %v5481_v5  ;;  %4001 = vmatpush1.bf16.msra.mxu1 %v5484_v6 }
 0x2d0   :  { %3916 = vmatprep.subr.bf16.mxu0 %v5489_v7  ;;  %4002 = vmatprep.subr.bf16.mxu1 %v5492_v8 }
 0x2d3   :  { %3917 = vmatpush1.bf16.msra.mxu0 %v5487_v9  ;;  %4003 = vmatpush1.bf16.msra.mxu1 %v5490_v10 }
 0x2d4   :  { %3918 = vmatprep.subr.bf16.mxu0 %v5495_v11  ;;  %4004 = vmatprep.subr.bf16.mxu1 %v5498_v12 }
 0x2d7   :  { %3919 = vmatpush1.bf16.msra.mxu0 %v5493_v13  ;;  %4005 = vmatpush1.bf16.msra.mxu1 %v5496_v14 }
 0x2d8   :  { %3920 = vmatprep.subr.bf16.mxu0 %v5501_v15  ;;  %4006 = vmatprep.subr.bf16.mxu1 %v5504_v16 }
 0x2db   :  { %3921 = vmatpush1.bf16.msra.mxu0 %v5499_v17  ;;  %4007 = vmatpush1.bf16.msra.mxu1 %v5502_v20 }
 0x2dc   :  { %3922 = vmatprep.subr.bf16.mxu0 %v5507_v22  ;;  %4008 = vmatprep.subr.bf16.mxu1 %v5510_v23 }
 0x2df   :  { %3923 = vmatpush1.bf16.msra.mxu0 %v5505_v24  ;;  %4009 = vmatpush1.bf16.msra.mxu1 %v5508_v25 }
 0x2e0   :  { %3924 = vmatprep.subr.bf16.mxu0 %v5513_v26  ;;  %4010 = vmatprep.subr.bf16.mxu1 %v5516_v27 }
 0x2e3   :  { %3925 = vmatpush1.bf16.msra.mxu0 %v5511_v28  ;;  %4011 = vmatpush1.bf16.msra.mxu1 %v5514_v29 }
 0x2e4   :  { %3926 = vmatprep.subr.bf16.mxu0 %v5519_v30  ;;  %4012 = vmatprep.subr.bf16.mxu1 %v5522_v31  ;;  %v5553_v30 = vld [vmem:[%s7605_s7 + $0x380] ss:$28 sps:$4 sm:$0xff]   ;;  %v5556_v31 = vld [vmem:[%s7605_s7 + $0x388] ss:$28 sps:$4 sm:$0xff]  }
 0x2e7   :  { %3927 = vmatpush1.bf16.msra.mxu0 %v5517_v32  ;;  %4013 = vmatpush1.bf16.msra.mxu1 %v5520_v33  ;;  %v5561_v32 = vld [vmem:[%s7605_s7 + $0x3bc] ss:$28 sps:$4 sm:$0xff]   ;;  %v5564_v33 = vld [vmem:[%s7605_s7 + $0x3c4] ss:$28 sps:$4 sm:$0xff]  }
 0x2e8   :  { %3928 = vmatprep.subr.bf16.mxu0 %v5525_v34  ;;  %4014 = vmatprep.subr.bf16.mxu1 %v5528_v35  ;;  %v5559_v34 = vld [vmem:[%s7605_s7 + $0x3b8] ss:$28 sps:$4 sm:$0xff]   ;;  %v5562_v35 = vld [vmem:[%s7605_s7 + $0x3c0] ss:$28 sps:$4 sm:$0xff]  }
 0x2eb   :  { %3929 = vmatpush1.bf16.msra.mxu0 %v5523_v36  ;;  %4015 = vmatpush1.bf16.msra.mxu1 %v5526_v37  ;;  %v5567_v36 = vld [vmem:[%s7605_s7 + $0x3f4] ss:$28 sps:$4 sm:$0xff]   ;;  %v5570_v37 = vld [vmem:[%s7605_s7 + $0x3fc] ss:$28 sps:$4 sm:$0xff]  }
 0x2ec   :  { %3930 = vmatprep.subr.bf16.mxu0 %v5531_v38  ;;  %4016 = vmatprep.subr.bf16.mxu1 %v5534_v39  ;;  %v5565_v38 = vld [vmem:[%s7605_s7 + $0x3f0] ss:$28 sps:$4 sm:$0xff]   ;;  %v5568_v39 = vld [vmem:[%s7605_s7 + $0x3f8] ss:$28 sps:$4 sm:$0xff]  }
 0x2ef   :  { %3931 = vmatpush1.bf16.msra.mxu0 %v5529_v40  ;;  %4017 = vmatpush1.bf16.msra.mxu1 %v5532_v41  ;;  %v5573_v40 = vld [vmem:[%s7605_s7 + $0x42c] ss:$28 sps:$4 sm:$0xff]   ;;  %v5576_v41 = vld [vmem:[%s7605_s7 + $0x434] ss:$28 sps:$4 sm:$0xff]  }
 0x2f0   :  { %3932 = vmatprep.subr.bf16.mxu0 %v5537_v44  ;;  %4018 = vmatprep.subr.bf16.mxu1 %v5540_v45  ;;  %v5571_v44 = vld [vmem:[%s7605_s7 + $0x428] ss:$28 sps:$4 sm:$0xff]   ;;  %v5574_v45 = vld [vmem:[%s7605_s7 + $0x430] ss:$28 sps:$4 sm:$0xff]  }
 0x2f3   :  { %3933 = vmatpush1.bf16.msra.mxu0 %v5535_v46  ;;  %4019 = vmatpush1.bf16.msra.mxu1 %v5538_v47  ;;  %v5579_v46 = vld [vmem:[%s7605_s7 + $0x464] ss:$28 sps:$4 sm:$0xff]   ;;  %v5582_v47 = vld [vmem:[%s7605_s7 + $0x46c] ss:$28 sps:$4 sm:$0xff]  }
 0x2f4   :  { %3934 = vmatprep.subr.bf16.mxu0 %v5543_v48  ;;  %4020 = vmatprep.subr.bf16.mxu1 %v5546_v49  ;;  %v5577_v48 = vld [vmem:[%s7605_s7 + $0x460] ss:$28 sps:$4 sm:$0xff]   ;;  %v5580_v49 = vld [vmem:[%s7605_s7 + $0x468] ss:$28 sps:$4 sm:$0xff]  }
 0x2f7   :  { %3935 = vmatpush1.bf16.msra.mxu0 %v5541_v50  ;;  %4021 = vmatpush1.bf16.msra.mxu1 %v5544_v51  ;;  %v5585_v50 = vld [vmem:[%s7605_s7 + $0x49c] ss:$28 sps:$4 sm:$0xff]   ;;  %v5588_v51 = vld [vmem:[%s7605_s7 + $0x4a4] ss:$28 sps:$4 sm:$0xff]  }
 0x2f8   :  { %3936 = vmatprep.subr.bf16.mxu0 %v5549_v52  ;;  %4022 = vmatprep.subr.bf16.mxu1 %v5552_v53  ;;  %v5583_v52 = vld [vmem:[%s7605_s7 + $0x498] ss:$28 sps:$4 sm:$0xff]   ;;  %v5586_v53 = vld [vmem:[%s7605_s7 + $0x4a0] ss:$28 sps:$4 sm:$0xff]  }
 0x2fb   :  { %3937 = vmatpush1.bf16.msra.mxu0 %v5547_v54  ;;  %4023 = vmatpush1.bf16.msra.mxu1 %v5550_v55  ;;  %v5591_v54 = vld [vmem:[%s7605_s7 + $0x4d4] ss:$28 sps:$4 sm:$0xff]   ;;  %v5594_v55 = vld [vmem:[%s7605_s7 + $0x4dc] ss:$28 sps:$4 sm:$0xff]  }
 0x2fc   :  { %3949 = vmatprep.subr.bf16.mxu0 %v5555_v56  ;;  %4035 = vmatprep.subr.bf16.mxu1 %v5558_v57  ;;  %v5589_v56 = vld [vmem:[%s7605_s7 + $0x4d0] ss:$28 sps:$4 sm:$0xff]   ;;  %v5592_v57 = vld [vmem:[%s7605_s7 + $0x4d8] ss:$28 sps:$4 sm:$0xff]  }
 0x391   :  { %v2397_v63 = vpop.f32.mrb[8].mxu0  ;;  %v2440_v1 = vpop.f32.mrb[12].mxu1 }
 0x392   :  { %v2398_v0 = vadd.f32 %v2397_v63, %v2186_v59  ;;  %v2441_v2 = vadd.f32 %v2440_v1, %v2194_v60  ;;  %v2399_v3 = vpop.f32.mrb[9].mxu0  ;;  %v2442_v4 = vpop.f32.mrb[13].mxu1  ;;  %v5606_v63 = vld [vmem:[%s7605_s7 + $0x54c] ss:$28 sps:$4 sm:$0xff]   ;;  %v5601_v1 = vld [vmem:[%s7605_s7 + $0x540] ss:$28 sps:$4 sm:$0xff]  }
 0x393   :  { %v2400_v5 = vadd.f32 %v2399_v3, %v2190_v61  ;;  %v2443_v6 = vadd.f32 %v2442_v4, %v2198_v62  ;;  %v2401_v7 = vpop.f32.mrb[10].mxu0  ;;  %v2444_v8 = vpop.f32.mrb[14].mxu1  ;;  %v5612_v3 = vld [vmem:[%s7605_s7 + $0x584] ss:$28 sps:$4 sm:$0xff]   ;;  %v5607_v4 = vld [vmem:[%s7605_s7 + $0x578] ss:$28 sps:$4 sm:$0xff]  }
 0x394   :  { %v2402_v9 = vadd.f32 %v2401_v7, %v2186_v59  ;;  %v2445_v10 = vadd.f32 %v2444_v8, %v2194_v60  ;;  %v2403_v11 = vpop.f32.mrb[11].mxu0  ;;  %v2446_v12 = vpop.f32.mrb[15].mxu1  ;;  %v2449_v15 = vmax.f32 %v2398_v0, 0.0  ;;  %v2451_v16 = vmax.f32 %v2441_v2, 0.0  ;;  %v5600_v59 = vld [vmem:[%s7605_s7 + $0x514] ss:$28 sps:$4 sm:$0xff]  }
 0x395   :  { %v2404_v13 = vadd.f32 %v2403_v11, %v2190_v61  ;;  %v2447_v14 = vadd.f32 %v2446_v12, %v2198_v62  ;;  %v2450_v22 = vmax.f32 %v2400_v5, 0.0  ;;  %v2452_v23 = vmax.f32 %v2443_v6, 0.0  ;;  %v5595_v60 = vld [vmem:[%s7605_s7 + $0x508] ss:$28 sps:$4 sm:$0xff]   ;;  %v5598_v61 = vld [vmem:[%s7605_s7 + $0x510] ss:$28 sps:$4 sm:$0xff]  }
 0x396   :  { %v2453_v17 = vmax.f32 %v2402_v9, 0.0  ;;  %v2455_v20 = vmax.f32 %v2445_v10, 0.0  ;;  %v5603_v62 = vld [vmem:[%s7605_s7 + $0x544] ss:$28 sps:$4 sm:$0xff]   ;;  %v5609_v2 = vld [vmem:[%s7605_s7 + $0x57c] ss:$28 sps:$4 sm:$0xff]  }
 0x397   :  { %v2454_v24 = vmax.f32 %v2404_v13, 0.0  ;;  %v2456_v25 = vmax.f32 %v2447_v14, 0.0  ;;  %v5604_v0 = vld [vmem:[%s7605_s7 + $0x548] ss:$28 sps:$4 sm:$0xff]   ;;  %v5610_v5 = vld [vmem:[%s7605_s7 + $0x580] ss:$28 sps:$4 sm:$0xff]  }
 0x398   :  { %v7041_v26 = vpack.c.bf16 %v2453_v17, %v2449_v15  ;;  %v7043_v27 = vpack.c.bf16 %v2455_v20, %v2451_v16  ;;  %v5615_v6 = vld [vmem:[%s7605_s7 + $0x5b4] ss:$28 sps:$4 sm:$0xff]   ;;  %v5618_v7 = vld [vmem:[%s7605_s7 + $0x5bc] ss:$28 sps:$4 sm:$0xff]   ;;  %v5621_v10 = vld [vmem:[%s7605_s7 + $0x5ec] ss:$28 sps:$4 sm:$0xff]  }
 0x399   :  { %v7045_v28 = vpack.c.bf16 %v2454_v24, %v2450_v22  ;;  %v7047_v29 = vpack.c.bf16 %v2456_v25, %v2452_v23  ;;  %v5613_v8 = vld [vmem:[%s7605_s7 + $0x5b0] ss:$28 sps:$4 sm:$0xff]   ;;  %v5616_v9 = vld [vmem:[%s7605_s7 + $0x5b8] ss:$28 sps:$4 sm:$0xff]   ;;  %v5619_v12 = vld [vmem:[%s7605_s7 + $0x5e8] ss:$28 sps:$4 sm:$0xff]  }
 0x39a   :  { %v5624_v11 = vld [vmem:[%s7605_s7 + $0x5f4] ss:$28 sps:$4 sm:$0xff]   ;;  %v5627_v14 = vld [vmem:[%s7605_s7 + $0x624] ss:$28 sps:$4 sm:$0xff]   ;;  %v5630_v15 = vld [vmem:[%s7605_s7 + $0x62c] ss:$28 sps:$4 sm:$0xff]  }
 0x39b   :  { %3938 = vmatprep.mubr.bf16.mxu0 %v7045_v28  ;;  %4024 = vmatprep.mubr.bf16.mxu1 %v7045_v28  ;;  %v5622_v13 = vld [vmem:[%s7605_s7 + $0x5f0] ss:$28 sps:$4 sm:$0xff]   ;;  %v5625_v16 = vld [vmem:[%s7605_s7 + $0x620] ss:$28 sps:$4 sm:$0xff]   ;;  %v5628_v17 = vld [vmem:[%s7605_s7 + $0x628] ss:$28 sps:$4 sm:$0xff]  }
 0x39c   :  { %3939 = vmatmul.mubr.bf16.vlgmr.msra.gmra.mrb[12].mxu0 %v7041_v26  ;;  %4025 = vmatmul.mubr.bf16.vlgmr.msra.gmra.mrb[16].mxu1 %v7041_v26  ;;  %v5633_v20 = vld [vmem:[%s7605_s7 + $0x65c] ss:$28 sps:$4 sm:$0xff]   ;;  %v5636_v22 = vld [vmem:[%s7605_s7 + $0x664] ss:$28 sps:$4 sm:$0xff]   ;;  %v5639_v25 = vld [vmem:[%s7605_s7 + $0x694] ss:$28 sps:$4 sm:$0xff]  }
 0x39d   :  { %3950 = vmatpush1.bf16.msra.mxu0 %v5553_v30  ;;  %4036 = vmatpush1.bf16.msra.mxu1 %v5556_v31  ;;  %v5631_v23 = vld [vmem:[%s7605_s7 + $0x658] ss:$28 sps:$4 sm:$0xff]   ;;  %v5634_v24 = vld [vmem:[%s7605_s7 + $0x660] ss:$28 sps:$4 sm:$0xff]   ;;  %v5637_v31 = vld [vmem:[%s7605_s7 + $0x690] ss:$28 sps:$4 sm:$0xff]  }
 0x39e   :  { %3981 = vmatprep.mubr.bf16.mxu0 %v7047_v29  ;;  %4067 = vmatprep.mubr.bf16.mxu1 %v7047_v29  ;;  %v5642_v30 = vld [vmem:[%s7605_s7 + $0x69c] ss:$28 sps:$4 sm:$0xff]  }
 0x39f   :  { %3951 = vmatprep.subr.bf16.mxu0 %v5561_v32  ;;  %4037 = vmatprep.subr.bf16.mxu1 %v5564_v33  ;;  %v5640_v32 = vld [vmem:[%s7605_s7 + $0x698] ss:$28 sps:$4 sm:$0xff]   ;;  %v5645_v33 = vld [vmem:[%s7605_s7 + $0x6cc] ss:$28 sps:$4 sm:$0xff]  }
 0x3a1   :  { %3952 = vmatpush1.bf16.msra.mxu0 %v5559_v34  ;;  %4038 = vmatpush1.bf16.msra.mxu1 %v5562_v35  ;;  %v5648_v34 = vld [vmem:[%s7605_s7 + $0x6d4] ss:$28 sps:$4 sm:$0xff]   ;;  %v5643_v35 = vld [vmem:[%s7605_s7 + $0x6c8] ss:$28 sps:$4 sm:$0xff]  }
 0x3a2   :  { %3953 = vmatprep.subr.bf16.mxu0 %v5567_v36  ;;  %4039 = vmatprep.subr.bf16.mxu1 %v5570_v37  ;;  %v5646_v36 = vld [vmem:[%s7605_s7 + $0x6d0] ss:$28 sps:$4 sm:$0xff]  }
 0x3a3   :  { %v5651_v37 = vld [vmem:[%s7605_s7 + $0x14] ss:$28 sps:$4 sm:$0xff]  }
 0x3a5   :  { %3954 = vmatpush1.bf16.msra.mxu0 %v5565_v38  ;;  %4040 = vmatpush1.bf16.msra.mxu1 %v5568_v39  ;;  %v5652_v38 = vld [vmem:[%s7605_s7 + $0x1d8] ss:$28 sps:$4 sm:$0xff]   ;;  %v5649_v39 = vld [vmem:[%s7605_s7 + $0x10] ss:$28 sps:$4 sm:$0xff]  }
 0x3a6   :  { %3955 = vmatprep.subr.bf16.mxu0 %v5573_v40  ;;  %4041 = vmatprep.subr.bf16.mxu1 %v5576_v41  ;;  %v5653_v40 = vld [vmem:[%s7605_s7 + $0x18] ss:$28 sps:$4 sm:$0xff]   ;;  %v5656_v41 = vld [vmem:[%s7605_s7 + $0x4c] ss:$28 sps:$4 sm:$0xff]  }
 0x3a9   :  { %3956 = vmatpush1.bf16.msra.mxu0 %v5571_v44  ;;  %4042 = vmatpush1.bf16.msra.mxu1 %v5574_v45  ;;  %v5657_v44 = vld [vmem:[%s7605_s7 + $0x210] ss:$28 sps:$4 sm:$0xff]   ;;  %v5654_v45 = vld [vmem:[%s7605_s7 + $0x48] ss:$28 sps:$4 sm:$0xff]  }
 0x3aa   :  { %3957 = vmatprep.subr.bf16.mxu0 %v5579_v46  ;;  %4043 = vmatprep.subr.bf16.mxu1 %v5582_v47  ;;  %v5658_v46 = vld [vmem:[%s7605_s7 + $0x50] ss:$28 sps:$4 sm:$0xff]   ;;  %v5661_v47 = vld [vmem:[%s7605_s7 + $0x84] ss:$28 sps:$4 sm:$0xff]  }
 0x3ad   :  { %3958 = vmatpush1.bf16.msra.mxu0 %v5577_v48  ;;  %4044 = vmatpush1.bf16.msra.mxu1 %v5580_v49  ;;  %v5662_v48 = vld [vmem:[%s7605_s7 + $0x248] ss:$28 sps:$4 sm:$0xff]   ;;  %v5659_v49 = vld [vmem:[%s7605_s7 + $0x80] ss:$28 sps:$4 sm:$0xff]  }
 0x3ae   :  { %3959 = vmatprep.subr.bf16.mxu0 %v5585_v50  ;;  %4045 = vmatprep.subr.bf16.mxu1 %v5588_v51  ;;  %v5666_v50 = vld [vmem:[%s7605_s7 + $0xbc] ss:$28 sps:$4 sm:$0xff]  }
 0x3af   :  { %v5667_v51 = vld [vmem:[%s7605_s7 + $0x280] ss:$28 sps:$4 sm:$0xff]  }
 0x3b1   :  { %3960 = vmatpush1.bf16.msra.mxu0 %v5583_v52  ;;  %4046 = vmatpush1.bf16.msra.mxu1 %v5586_v53  ;;  %v5664_v52 = vld [vmem:[%s7605_s7 + $0xb8] ss:$28 sps:$4 sm:$0xff]   ;;  %v5668_v53 = vld [vmem:[%s7605_s7 + $0xc0] ss:$28 sps:$4 sm:$0xff]  }
 0x3b2   :  { %3961 = vmatprep.subr.bf16.mxu0 %v5591_v54  ;;  %4047 = vmatprep.subr.bf16.mxu1 %v5594_v55  ;;  %v5671_v54 = vld [vmem:[%s7605_s7 + $0xf4] ss:$28 sps:$4 sm:$0xff]  }
 0x3b3   :  { %v5672_v55 = vld [vmem:[%s7605_s7 + $0x2b8] ss:$28 sps:$4 sm:$0xff]  }
 0x3b5   :  { %3962 = vmatpush1.bf16.msra.mxu0 %v5589_v56  ;;  %4048 = vmatpush1.bf16.msra.mxu1 %v5592_v57  ;;  %v5669_v56 = vld [vmem:[%s7605_s7 + $0xf0] ss:$28 sps:$4 sm:$0xff]   ;;  %v5673_v57 = vld [vmem:[%s7605_s7 + $0xf8] ss:$28 sps:$4 sm:$0xff]  }
 0x3b6   :  { %3963 = vmatprep.subr.bf16.mxu0 %v5597_v58  ;;  %4049 = vmatprep.subr.bf16.mxu1 %v5600_v59  ;;  %v5676_v58 = vld [vmem:[%s7605_s7 + $0x12c] ss:$28 sps:$4 sm:$0xff]  }
 0x3b7   :  { %v5677_v59 = vld [vmem:[%s7605_s7 + $0x2f0] ss:$28 sps:$4 sm:$0xff]  }
 0x3b9   :  { %3964 = vmatpush1.bf16.msra.mxu0 %v5595_v60  ;;  %4050 = vmatpush1.bf16.msra.mxu1 %v5598_v61  ;;  %v5674_v60 = vld [vmem:[%s7605_s7 + $0x128] ss:$28 sps:$4 sm:$0xff]   ;;  %v5678_v61 = vld [vmem:[%s7605_s7 + $0x130] ss:$28 sps:$4 sm:$0xff]  }
 0x3ba   :  { %3965 = vmatprep.subr.bf16.mxu0 %v5603_v62  ;;  %4051 = vmatprep.subr.bf16.mxu1 %v5606_v63  ;;  %v5681_v62 = vld [vmem:[%s7605_s7 + $0x164] ss:$28 sps:$4 sm:$0xff]  }
 0x3bb   :  { %v5682_v63 = vld [vmem:[%s7605_s7 + $0x328] ss:$28 sps:$4 sm:$0xff]  }
 0x3bd   :  { %3966 = vmatpush1.bf16.msra.mxu0 %v5601_v1  ;;  %4052 = vmatpush1.bf16.msra.mxu1 %v5604_v0  ;;  %v5679_v1 = vld [vmem:[%s7605_s7 + $0x160] ss:$28 sps:$4 sm:$0xff]   ;;  %v5683_v0 = vld [vmem:[%s7605_s7 + $0x168] ss:$28 sps:$4 sm:$0xff]  }
 0x3be   :  { %3967 = vmatprep.subr.bf16.mxu0 %v5609_v2  ;;  %4053 = vmatprep.subr.bf16.mxu1 %v5612_v3  ;;  %v5686_v2 = vld [vmem:[%s7605_s7 + $0x19c] ss:$28 sps:$4 sm:$0xff]  }
 0x3bf   :  { %v5687_v3 = vld [vmem:[%s7605_s7 + $0x360] ss:$28 sps:$4 sm:$0xff]  }
 0x3c1   :  { %3968 = vmatpush1.bf16.msra.mxu0 %v5607_v4  ;;  %4054 = vmatpush1.bf16.msra.mxu1 %v5610_v5  ;;  %v5684_v4 = vld [vmem:[%s7605_s7 + $0x198] ss:$28 sps:$4 sm:$0xff]   ;;  %v5688_v5 = vld [vmem:[%s7605_s7 + $0x1a0] ss:$28 sps:$4 sm:$0xff]  }
 0x3c2   :  { %3969 = vmatprep.subr.bf16.mxu0 %v5615_v6  ;;  %4055 = vmatprep.subr.bf16.mxu1 %v5618_v7  ;;  %v5691_v6 = vld [vmem:[%s7605_s7 + $0x1d4] ss:$28 sps:$4 sm:$0xff]  }
 0x3c3   :  { %v5692_v7 = vld [vmem:[%s7605_s7 + $0x558] ss:$28 sps:$4 sm:$0xff]  }
 0x3c5   :  { %3970 = vmatpush1.bf16.msra.mxu0 %v5613_v8  ;;  %4056 = vmatpush1.bf16.msra.mxu1 %v5616_v9  ;;  %v5689_v8 = vld [vmem:[%s7605_s7 + $0x1d0] ss:$28 sps:$4 sm:$0xff]   ;;  %v5693_v9 = vld [vmem:[%s7605_s7 + $0x398] ss:$28 sps:$4 sm:$0xff]  }
 0x3c6   :  { %3971 = vmatprep.subr.bf16.mxu0 %v5621_v10  ;;  %4057 = vmatprep.subr.bf16.mxu1 %v5624_v11  ;;  %v5696_v10 = vld [vmem:[%s7605_s7 + $0x20c] ss:$28 sps:$4 sm:$0xff]  }
 0x3c7   :  { %v5697_v11 = vld [vmem:[%s7605_s7 + $0x590] ss:$28 sps:$4 sm:$0xff]  }
 0x3c9   :  { %3972 = vmatpush1.bf16.msra.mxu0 %v5619_v12  ;;  %4058 = vmatpush1.bf16.msra.mxu1 %v5622_v13  ;;  %v5694_v12 = vld [vmem:[%s7605_s7 + $0x208] ss:$28 sps:$4 sm:$0xff]   ;;  %v5698_v13 = vld [vmem:[%s7605_s7 + $0x3d0] ss:$28 sps:$4 sm:$0xff]  }
 0x3ca   :  { %3973 = vmatprep.subr.bf16.mxu0 %v5627_v14  ;;  %4059 = vmatprep.subr.bf16.mxu1 %v5630_v15  ;;  %v5701_v14 = vld [vmem:[%s7605_s7 + $0x244] ss:$28 sps:$4 sm:$0xff]  }
 0x3cb   :  { %v5702_v15 = vld [vmem:[%s7605_s7 + $0x5c8] ss:$28 sps:$4 sm:$0xff]  }
 0x3cd   :  { %3974 = vmatpush1.bf16.msra.mxu0 %v5625_v16  ;;  %4060 = vmatpush1.bf16.msra.mxu1 %v5628_v17  ;;  %v5699_v16 = vld [vmem:[%s7605_s7 + $0x240] ss:$28 sps:$4 sm:$0xff]   ;;  %v5703_v17 = vld [vmem:[%s7605_s7 + $0x408] ss:$28 sps:$4 sm:$0xff]  }
 0x3ce   :  { %3975 = vmatprep.subr.bf16.mxu0 %v5633_v20  ;;  %4061 = vmatprep.subr.bf16.mxu1 %v5636_v22  ;;  %v5706_v20 = vld [vmem:[%s7605_s7 + $0x27c] ss:$28 sps:$4 sm:$0xff]  }
 0x3cf   :  { %v5707_v22 = vld [vmem:[%s7605_s7 + $0x600] ss:$28 sps:$4 sm:$0xff]  }
 0x3d1   :  { %3976 = vmatpush1.bf16.msra.mxu0 %v5631_v23  ;;  %4062 = vmatpush1.bf16.msra.mxu1 %v5634_v24  ;;  %v5704_v23 = vld [vmem:[%s7605_s7 + $0x278] ss:$28 sps:$4 sm:$0xff]   ;;  %v5708_v24 = vld [vmem:[%s7605_s7 + $0x440] ss:$28 sps:$4 sm:$0xff]  }
 0x3d2   :  { %3977 = vmatprep.subr.bf16.mxu0 %v5639_v25  ;;  %4063 = vmatprep.subr.bf16.mxu1 %v5642_v30  ;;  %v5711_v25 = vld [vmem:[%s7605_s7 + $0x2b4] ss:$28 sps:$4 sm:$0xff]  }
 0x3d3   :  { %v5712_v30 = vld [vmem:[%s7605_s7 + $0x638] ss:$28 sps:$4 sm:$0xff]  }
 0x3d5   :  { %3978 = vmatpush1.bf16.msra.mxu0 %v5637_v31  ;;  %4064 = vmatpush1.bf16.msra.mxu1 %v5640_v32  ;;  %v5709_v31 = vld [vmem:[%s7605_s7 + $0x2b0] ss:$28 sps:$4 sm:$0xff]   ;;  %v5713_v32 = vld [vmem:[%s7605_s7 + $0x478] ss:$28 sps:$4 sm:$0xff]  }
 0x3d6   :  { %3979 = vmatprep.subr.bf16.mxu0 %v5645_v33  ;;  %4065 = vmatprep.subr.bf16.mxu1 %v5648_v34  ;;  %v5716_v33 = vld [vmem:[%s7605_s7 + $0x2ec] ss:$28 sps:$4 sm:$0xff]  }
 0x3d7   :  { %v5717_v34 = vld [vmem:[%s7605_s7 + $0x670] ss:$28 sps:$4 sm:$0xff]  }
 0x3d9   :  { %3980 = vmatpush1.bf16.msra.mxu0 %v5643_v35  ;;  %4066 = vmatpush1.bf16.msra.mxu1 %v5646_v36  ;;  %v5714_v35 = vld [vmem:[%s7605_s7 + $0x2e8] ss:$28 sps:$4 sm:$0xff]   ;;  %v5718_v36 = vld [vmem:[%s7605_s7 + $0x4b0] ss:$28 sps:$4 sm:$0xff]  }
 0x3da   :  { %4078 = vmatprep.subr.bf16.mxu0 %v5651_v37  ;;  %4930 = vmatprep.subr.bf16.mxu1 %v5652_v38  ;;  %v5721_v37 = vld [vmem:[%s7605_s7 + $0x324] ss:$28 sps:$4 sm:$0xff]  }
 0x3db   :  { %v5722_v38 = vld [vmem:[%s7605_s7 + $0x6a8] ss:$28 sps:$4 sm:$0xff]  }
 0x3dc   :  { %3982 = vmatmul.mubr.bf16.vlgmr.msra.gmra.mrb[12].mxu0 %v7043_v27  ;;  %4068 = vmatmul.mubr.bf16.vlgmr.msra.gmra.mrb[16].mxu1 %v7043_v27 }
 0x3dd   :  { %4079 = vmatpush1.bf16.msra.mxu0 %v5649_v39  ;;  %4110 = vmatprep.mubr.bf16.mxu0 %v7045_v28  ;;  %v5719_v39 = vld [vmem:[%s7605_s7 + $0x320] ss:$28 sps:$4 sm:$0xff]  }
 0x3de   :  { %4931 = vmatpush3.bf16.msra.mxu1 %v5653_v40  ;;  %4196 = vmatprep.mubr.bf16.mxu1 %v7045_v28  ;;  %v5663_v28 = vld [vmem:[%s7605_s7 + $0x88] ss:$28 sps:$4 sm:$0xff]  }
 0x3df   :  { %4080 = vmatprep.subr.bf16.mxu0 %v5656_v41  ;;  %4932 = vmatprep.subr.bf16.mxu1 %v5657_v44  ;;  %v5723_v40 = vld [vmem:[%s7605_s7 + $0x4e8] ss:$28 sps:$4 sm:$0xff]   ;;  %v5726_v41 = vld [vmem:[%s7605_s7 + $0x35c] ss:$28 sps:$4 sm:$0xff]  }
 0x3e0   :  { %v5727_v44 = vld [vmem:[%s7605_s7 + $0x6e0] ss:$28 sps:$4 sm:$0xff]  }
 0x3e1   :  { %4081 = vmatpush1.bf16.msra.mxu0 %v5654_v45  ;;  %v5724_v45 = vld [vmem:[%s7605_s7 + $0x358] ss:$28 sps:$4 sm:$0xff]  }
 0x3e2   :  { %4933 = vmatpush3.bf16.msra.mxu1 %v5658_v46  ;;  %4082 = vmatprep.subr.bf16.mxu0 %v5661_v47  ;;  %v5728_v46 = vld [vmem:[%s7605_s7 + $0x520] ss:$28 sps:$4 sm:$0xff]   ;;  %v5731_v47 = vld [vmem:[%s7605_s7 + $0x394] ss:$28 sps:$4 sm:$0xff]  }
 0x3e3   :  { %4934 = vmatprep.subr.bf16.mxu1 %v5662_v48  ;;  %v5729_v48 = vld [vmem:[%s7605_s7 + $0x390] ss:$28 sps:$4 sm:$0xff]  }
 0x3e5   :  { %4083 = vmatpush1.bf16.msra.mxu0 %v5659_v49  ;;  %v5734_v49 = vld [vmem:[%s7605_s7 + $0x3cc] ss:$28 sps:$4 sm:$0xff]  }
 0x3e6   :  { %4935 = vmatpush3.bf16.msra.mxu1 %v5663_v28  ;;  %4084 = vmatprep.subr.bf16.mxu0 %v5666_v50  ;;  %v5732_v28 = vld [vmem:[%s7605_s7 + $0x3c8] ss:$28 sps:$4 sm:$0xff]  }
 0x3e7   :  { %4936 = vmatprep.subr.bf16.mxu1 %v5667_v51  ;;  %v5737_v50 = vld [vmem:[%s7605_s7 + $0x404] ss:$28 sps:$4 sm:$0xff]  }
 0x3e8   :  { %v5735_v51 = vld [vmem:[%s7605_s7 + $0x400] ss:$28 sps:$4 sm:$0xff]  }
 0x3e9   :  { %4085 = vmatpush1.bf16.msra.mxu0 %v5664_v52  ;;  %v5743_v52 = vld [vmem:[%s7605_s7 + $0x474] ss:$28 sps:$4 sm:$0xff]  }
 0x3ea   :  { %4937 = vmatpush3.bf16.msra.mxu1 %v5668_v53  ;;  %4086 = vmatprep.subr.bf16.mxu0 %v5671_v54  ;;  %v5741_v53 = vld [vmem:[%s7605_s7 + $0x470] ss:$28 sps:$4 sm:$0xff]  }
 0x3eb   :  { %4938 = vmatprep.subr.bf16.mxu1 %v5672_v55  ;;  %v5746_v54 = vld [vmem:[%s7605_s7 + $0x4ac] ss:$28 sps:$4 sm:$0xff]  }
 0x3ec   :  { %v5744_v55 = vld [vmem:[%s7605_s7 + $0x4a8] ss:$28 sps:$4 sm:$0xff]  }
 0x3ed   :  { %4087 = vmatpush1.bf16.msra.mxu0 %v5669_v56  ;;  %v5749_v56 = vld [vmem:[%s7605_s7 + $0x4e4] ss:$28 sps:$4 sm:$0xff]  }
 0x3ee   :  { %4939 = vmatpush3.bf16.msra.mxu1 %v5673_v57  ;;  %4088 = vmatprep.subr.bf16.mxu0 %v5676_v58  ;;  %v5747_v57 = vld [vmem:[%s7605_s7 + $0x4e0] ss:$28 sps:$4 sm:$0xff]  }
 0x3ef   :  { %4940 = vmatprep.subr.bf16.mxu1 %v5677_v59  ;;  %v5752_v58 = vld [vmem:[%s7605_s7 + $0x51c] ss:$28 sps:$4 sm:$0xff]  }
 0x3f0   :  { %v5750_v59 = vld [vmem:[%s7605_s7 + $0x518] ss:$28 sps:$4 sm:$0xff]  }
 0x3f1   :  { %4089 = vmatpush1.bf16.msra.mxu0 %v5674_v60  ;;  %v5755_v60 = vld [vmem:[%s7605_s7 + $0x554] ss:$28 sps:$4 sm:$0xff]  }
 0x3f2   :  { %4941 = vmatpush3.bf16.msra.mxu1 %v5678_v61  ;;  %4090 = vmatprep.subr.bf16.mxu0 %v5681_v62  ;;  %v5753_v61 = vld [vmem:[%s7605_s7 + $0x550] ss:$28 sps:$4 sm:$0xff]  }
 0x3f3   :  { %4942 = vmatprep.subr.bf16.mxu1 %v5682_v63  ;;  %v5758_v62 = vld [vmem:[%s7605_s7 + $0x58c] ss:$28 sps:$4 sm:$0xff]  }
 0x3f4   :  { %v5756_v63 = vld [vmem:[%s7605_s7 + $0x588] ss:$28 sps:$4 sm:$0xff]  }
 0x3f5   :  { %4091 = vmatpush1.bf16.msra.mxu0 %v5679_v1  ;;  %v5761_v1 = vld [vmem:[%s7605_s7 + $0x5c4] ss:$28 sps:$4 sm:$0xff]  }
 0x3f6   :  { %4943 = vmatpush3.bf16.msra.mxu1 %v5683_v0  ;;  %4092 = vmatprep.subr.bf16.mxu0 %v5686_v2  ;;  %v5759_v0 = vld [vmem:[%s7605_s7 + $0x5c0] ss:$28 sps:$4 sm:$0xff]  }
 0x3f7   :  { %4944 = vmatprep.subr.bf16.mxu1 %v5687_v3  ;;  %v5764_v2 = vld [vmem:[%s7605_s7 + $0x5fc] ss:$28 sps:$4 sm:$0xff]  }
 0x3f8   :  { %v5762_v3 = vld [vmem:[%s7605_s7 + $0x5f8] ss:$28 sps:$4 sm:$0xff]  }
 0x3f9   :  { %4093 = vmatpush1.bf16.msra.mxu0 %v5684_v4  ;;  %v5767_v4 = vld [vmem:[%s7605_s7 + $0x634] ss:$28 sps:$4 sm:$0xff]  }
 0x3fa   :  { %4945 = vmatpush3.bf16.msra.mxu1 %v5688_v5  ;;  %4094 = vmatprep.subr.bf16.mxu0 %v5691_v6  ;;  %v5765_v5 = vld [vmem:[%s7605_s7 + $0x630] ss:$28 sps:$4 sm:$0xff]  }
 0x3fb   :  { %4952 = vmatprep.subr.bf16.mxu1 %v5692_v7  ;;  %v5770_v6 = vld [vmem:[%s7605_s7 + $0x66c] ss:$28 sps:$4 sm:$0xff]  }
 0x3fc   :  { %v5768_v7 = vld [vmem:[%s7605_s7 + $0x668] ss:$28 sps:$4 sm:$0xff]  }
 0x3fd   :  { %4197 = vmatmul.mubr.bf16.vlgmr.msra.gmra.mrb[20].mxu1 %v7041_v26  ;;  %4095 = vmatpush1.bf16.msra.mxu0 %v5689_v8  ;;  %v5773_v8 = vld [vmem:[%s7605_s7 + $0x6a4] ss:$28 sps:$4 sm:$0xff]  }
 0x3fe   :  { %4953 = vmatpush3.bf16.msra.mxu1 %v5693_v9  ;;  %4237 = vmatprep.mubr.bf16.mxu1 %v7047_v29  ;;  %v5771_v9 = vld [vmem:[%s7605_s7 + $0x6a0] ss:$28 sps:$4 sm:$0xff]  }
 0x3ff   :  { %4096 = vmatprep.subr.bf16.mxu0 %v5696_v10  ;;  %4954 = vmatprep.subr.bf16.mxu1 %v5697_v11  ;;  %v5776_v10 = vld [vmem:[%s7605_s7 + $0x6dc] ss:$28 sps:$4 sm:$0xff]  }
 0x400   :  { %v5774_v11 = vld [vmem:[%s7605_s7 + $0x6d8] ss:$28 sps:$4 sm:$0xff]  }
 0x401   :  { %4097 = vmatpush1.bf16.msra.mxu0 %v5694_v12  ;;  %v7542_v12 = vld [vmem:[%s7609_s8] sm:$0xff] }
 0x402   :  { %4955 = vmatpush3.bf16.msra.mxu1 %v5698_v13  ;;  %4098 = vmatprep.subr.bf16.mxu0 %v5701_v14  ;;  %v2722_v13 = vrot.slane %v7542_v12, %v6707_v19  ;;  %v2730_v14 = vrot.slane %v7542_v12, %v6723_v42 }
 0x403   :  { %4956 = vmatprep.subr.bf16.mxu1 %v5702_v15  ;;  %v2726_v15 = vrot.slane %v7542_v12, %v6713_v21 }
 0x405   :  { %4099 = vmatpush1.bf16.msra.mxu0 %v5699_v16  ;;  %v2734_v16 = vrot.slane %v7542_v12, %v6726_v43 }
 0x406   :  { %4957 = vmatpush3.bf16.msra.mxu1 %v5703_v17  ;;  %4100 = vmatprep.subr.bf16.mxu0 %v5706_v20 }
 0x407   :  { %4958 = vmatprep.subr.bf16.mxu1 %v5707_v22 }
 0x409   :  { %4101 = vmatpush1.bf16.msra.mxu0 %v5704_v23 }
 0x40a   :  { %4959 = vmatpush3.bf16.msra.mxu1 %v5708_v24  ;;  %4102 = vmatprep.subr.bf16.mxu0 %v5711_v25 }
 0x40b   :  { %4960 = vmatprep.subr.bf16.mxu1 %v5712_v30 }
 0x40d   :  { %4103 = vmatpush1.bf16.msra.mxu0 %v5709_v31 }
 0x40e   :  { %4961 = vmatpush3.bf16.msra.mxu1 %v5713_v32  ;;  %4104 = vmatprep.subr.bf16.mxu0 %v5716_v33 }
 0x40f   :  { %4962 = vmatprep.subr.bf16.mxu1 %v5717_v34 }
 0x411   :  { %4105 = vmatpush1.bf16.msra.mxu0 %v5714_v35 }
 0x412   :  { %4963 = vmatpush3.bf16.msra.mxu1 %v5718_v36  ;;  %4106 = vmatprep.subr.bf16.mxu0 %v5721_v37 }
 0x413   :  { %4964 = vmatprep.subr.bf16.mxu1 %v5722_v38 }
 0x415   :  { %4107 = vmatpush1.bf16.msra.mxu0 %v5719_v39 }
 0x416   :  { %4965 = vmatpush3.bf16.msra.mxu1 %v5723_v40  ;;  %4108 = vmatprep.subr.bf16.mxu0 %v5726_v41 }
 0x417   :  { %4966 = vmatprep.subr.bf16.mxu1 %v5727_v44 }
 0x419   :  { %4109 = vmatpush1.bf16.msra.mxu0 %v5724_v45 }
 0x41a   :  { %4967 = vmatpush3.bf16.msra.mxu1 %v5728_v46  ;;  %4121 = vmatprep.subr.bf16.mxu0 %v5731_v47 }
 0x41c   :  { %4111 = vmatmul.mubr.bf16.vlgmr.msra.gmra.mrb[16].mxu0 %v7041_v26  ;;  %v5740_v26 = vld [vmem:[%s7605_s7 + $0x43c] ss:$28 sps:$4 sm:$0xff]  }
 0x41d   :  { %4238 = vmatmul.mubr.bf16.vlgmr.msra.gmra.mrb[24].mxu1 %v7043_v27  ;;  %4122 = vmatpush1.bf16.msra.mxu0 %v5729_v48 }
 0x41e   :  { %4153 = vmatprep.mubr.bf16.mxu0 %v7047_v29  ;;  %4123 = vmatprep.subr.bf16.mxu0 %v5734_v49  ;;  %v5738_v29 = vld [vmem:[%s7605_s7 + $0x438] ss:$28 sps:$4 sm:$0xff]  }
 0x421   :  { %4124 = vmatpush1.bf16.msra.mxu0 %v5732_v28 }
 0x422   :  { %4125 = vmatprep.subr.bf16.mxu0 %v5737_v50 }
 0x425   :  { %4126 = vmatpush1.bf16.msra.mxu0 %v5735_v51 }
 0x426   :  { %4127 = vmatprep.subr.bf16.mxu0 %v5740_v26 }
 0x429   :  { %4128 = vmatpush1.bf16.msra.mxu0 %v5738_v29 }
 0x42a   :  { %4129 = vmatprep.subr.bf16.mxu0 %v5743_v52 }
 0x42d   :  { %4130 = vmatpush1.bf16.msra.mxu0 %v5741_v53 }
 0x42e   :  { %4131 = vmatprep.subr.bf16.mxu0 %v5746_v54 }
 0x431   :  { %4132 = vmatpush1.bf16.msra.mxu0 %v5744_v55 }
 0x432   :  { %4133 = vmatprep.subr.bf16.mxu0 %v5749_v56 }
 0x435   :  { %4134 = vmatpush1.bf16.msra.mxu0 %v5747_v57 }
 0x436   :  { %4135 = vmatprep.subr.bf16.mxu0 %v5752_v58 }
 0x439   :  { %4136 = vmatpush1.bf16.msra.mxu0 %v5750_v59 }
 0x43a   :  { %4137 = vmatprep.subr.bf16.mxu0 %v5755_v60 }
 0x43d   :  { %4138 = vmatpush1.bf16.msra.mxu0 %v5753_v61 }
 0x43e   :  { %4139 = vmatprep.subr.bf16.mxu0 %v5758_v62 }
 0x441   :  { %4140 = vmatpush1.bf16.msra.mxu0 %v5756_v63 }
 0x442   :  { %4141 = vmatprep.subr.bf16.mxu0 %v5761_v1 }
 0x445   :  { %4142 = vmatpush1.bf16.msra.mxu0 %v5759_v0 }
 0x446   :  { %4143 = vmatprep.subr.bf16.mxu0 %v5764_v2 }
 0x449   :  { %4144 = vmatpush1.bf16.msra.mxu0 %v5762_v3 }
 0x44a   :  { %4145 = vmatprep.subr.bf16.mxu0 %v5767_v4 }
 0x44d   :  { %4146 = vmatpush1.bf16.msra.mxu0 %v5765_v5 }
 0x44e   :  { %4147 = vmatprep.subr.bf16.mxu0 %v5770_v6 }
 0x451   :  { %4148 = vmatpush1.bf16.msra.mxu0 %v5768_v7 }
 0x452   :  { %4149 = vmatprep.subr.bf16.mxu0 %v5773_v8  ;;  %v2745_v8 = vsub.s32 6, %v6704_v18 }
 0x455   :  { %4150 = vmatpush1.bf16.msra.mxu0 %v5771_v9  ;;  %v2746_v9 = vrot.slane %v7542_v12, %v2745_v8 }
 0x456   :  { %4151 = vmatprep.subr.bf16.mxu0 %v5776_v10 }
 0x459   :  { %4152 = vmatpush1.bf16.msra.mxu0 %v5774_v11 }
 0x45c   :  { %4154 = vmatmul.mubr.bf16.vlgmr.msra.gmra.mrb[16].mxu0 %v7043_v27 }
 0x4af   :  { %v3983_v17 = vpop.f32.mrb[12].mxu0  ;;  %v4069_v20 = vpop.f32.mrb[16].mxu1 }
 0x4b0   :  { %v4986_v27 = vadd.f32 %v3983_v17, %v2722_v13  ;;  %v4990_v22 = vadd.f32 %v4069_v20, %v2730_v14  ;;  %v3985_v23 = vpop.f32.mrb[13].mxu0  ;;  %v4071_v24 = vpop.f32.mrb[17].mxu1 }
 0x4b1   :  { %v4987_v25 = vadd.f32 %v3985_v23, %v2726_v15  ;;  %v4991_v30 = vadd.f32 %v4071_v24, %v2734_v16  ;;  %v3987_v31 = vpop.f32.mrb[14].mxu0  ;;  %v4073_v32 = vpop.f32.mrb[18].mxu1 }
 0x4b2   :  { %v4872_v19 = vmul.f32 -1.442695, %v4986_v27  ;;  %v4874_v33 = vmul.f32 -1.442695, %v4990_v22  ;;  %v4988_v34 = vadd.f32 %v3987_v31, %v2722_v13  ;;  %v4992_v42 = vadd.f32 %v4073_v32, %v2730_v14  ;;  %v3989_v35 = vpop.f32.mrb[15].mxu0  ;;  %v4075_v36 = vpop.f32.mrb[19].mxu1 }
 0x4b3   :  { %v4873_v21 = vmul.f32 -1.442695, %v4987_v25  ;;  %v4875_v37 = vmul.f32 -1.442695, %v4991_v30  ;;  %v4989_v38 = vadd.f32 %v3989_v35, %v2726_v15  ;;  %v4993_v43 = vadd.f32 %v4075_v36, %v2734_v16 }
 0x4b4   :  { %5777 = vpow2.f32 %v4872_v19  ;;  %v4879_v39 = vmul.f32 -1.442695, %v4988_v34  ;;  %v4881_v40 = vmul.f32 -1.442695, %v4992_v42  ;;  %v2737_v34 = vsub.s32 4, %v6704_v18 }
 0x4b5   :  { %5779 = vpow2.f32 %v4874_v33  ;;  %v4880_v41 = vmul.f32 -1.442695, %v4989_v38  ;;  %v4882_v44 = vmul.f32 -1.442695, %v4993_v43  ;;  %v2741_v42 = vsub.s32 5, %v6704_v18 }
 0x4b6   :  { %5781 = vpow2.f32 %v4873_v21  ;;  %v2738_v35 = vrot.slane %v7542_v12, %v2737_v34 }
 0x4b7   :  { %5783 = vpow2.f32 %v4875_v37  ;;  %v2742_v36 = vrot.slane %v7542_v12, %v2741_v42 }
 0x4b8   :  { %5785 = vpow2.f32 %v4879_v39 }
 0x4b9   :  { %5787 = vpow2.f32 %v4881_v40 }
 0x4ba   :  { %5789 = vpow2.f32 %v4880_v41 }
 0x4bb   :  { %5791 = vpow2.f32 %v4882_v44 }
 0x4be   :  { %v5778_v45 = vpop.eup %5777 }
 0x4bf   :  { %v5780_v46 = vpop.eup %5779  ;;  %v4288_v47 = vadd.f32 1.0, %v5778_v45 }
 0x4c0   :  { %v5782_v48 = vpop.eup %5781  ;;  %v4290_v49 = vadd.f32 1.0, %v5780_v46 }
 0x4c1   :  { %v5784_v28 = vpop.eup %5783  ;;  %5793 = vrcp.f32 %v4288_v47  ;;  %v4289_v50 = vadd.f32 1.0, %v5782_v48 }
 0x4c2   :  { %v5786_v51 = vpop.eup %5785  ;;  %5795 = vrcp.f32 %v4290_v49  ;;  %v4291_v26 = vadd.f32 1.0, %v5784_v28 }
 0x4c3   :  { %v5788_v29 = vpop.eup %5787  ;;  %5797 = vrcp.f32 %v4289_v50  ;;  %v4295_v52 = vadd.f32 1.0, %v5786_v51 }
 0x4c4   :  { %v5790_v53 = vpop.eup %5789  ;;  %5799 = vrcp.f32 %v4291_v26  ;;  %v4297_v54 = vadd.f32 1.0, %v5788_v29 }
 0x4c5   :  { %v5792_v55 = vpop.eup %5791  ;;  %5801 = vrcp.f32 %v4295_v52  ;;  %v4296_v56 = vadd.f32 1.0, %v5790_v53 }
 0x4c6   :  { %5803 = vrcp.f32 %v4297_v54  ;;  %v4298_v57 = vadd.f32 1.0, %v5792_v55 }
 0x4c7   :  { %5805 = vrcp.f32 %v4296_v56 }
 0x4c8   :  { %5807 = vrcp.f32 %v4298_v57 }
 0x4cb   :  { %v5794_v58 = vpop.eup %5793 }
 0x4cc   :  { %v5796_v59 = vpop.eup %5795  ;;  %4330 = vst [vmem:[%s7610_s9] sm:$0xff] %v5794_v58 }
 0x4cd   :  { %v5798_v60 = vpop.eup %5797  ;;  %4332 = vst [vmem:[%s7610_s9 + $0x10] sm:$0xff] %v5796_v59 }
 0x4ce   :  { %v5800_v61 = vpop.eup %5799  ;;  %4331 = vst [vmem:[%s7610_s9 + $0x8] sm:$0xff] %v5798_v60 }
 0x4cf   :  { %v5802_v62 = vpop.eup %5801  ;;  %4333 = vst [vmem:[%s7610_s9 + $0x18] sm:$0xff] %v5800_v61 }
 0x4d0   :  { %v5804_v63 = vpop.eup %5803  ;;  %4337 = vst [vmem:[%s7610_s9 + $0x38] sm:$0xff] %v5802_v62  ;;  %v4946_v1 = vpop.f32.mrb[20].mxu1 }
 0x4d1   :  { %v5806_v0 = vpop.eup %5805  ;;  %4339 = vst [vmem:[%s7610_s9 + $0x48] sm:$0xff] %v5804_v63  ;;  %v4947_v2 = vpop.f32.mrb[21].mxu1 }
 0x4d2   :  { %v5808_v3 = vpop.eup %5807  ;;  %4338 = vst [vmem:[%s7610_s9 + $0x40] sm:$0xff] %v5806_v0  ;;  %v4948_v4 = vadd.f32 %v4947_v2, %v4946_v1  ;;  %v4949_v5 = vpop.f32.mrb[22].mxu1 }
 0x4d3   :  { %4340 = vst [vmem:[%s7610_s9 + $0x50] sm:$0xff] %v5808_v3  ;;  %v4950_v6 = vpop.f32.mrb[23].mxu1 }
 0x4d4   :  { %v4951_v7 = vadd.f32 %v4950_v6, %v4949_v5  ;;  %v4199_v13 = vadd.f32 %v4948_v4, %v2746_v9 }
 0x4d6   :  { %v4202_v17 = vadd.f32 %v4951_v7, %v2746_v9 }
 0x4f0   :  { %v4968_v10 = vpop.f32.mrb[24].mxu1 }
 0x4f1   :  { %v4969_v11 = vpop.f32.mrb[25].mxu1 }
 0x4f2   :  { %v4970_v14 = vadd.f32 %v4969_v11, %v4968_v10  ;;  %v4971_v15 = vpop.f32.mrb[26].mxu1 }
 0x4f3   :  { %v4972_v16 = vpop.f32.mrb[27].mxu1 }
 0x4f4   :  { %v4240_v20 = vadd.f32 %v4970_v14, %v4199_v13  ;;  %v4973_v27 = vadd.f32 %v4972_v16, %v4971_v15 }
 0x4f6   :  { %v4878_v22 = vmul.f32 -1.442695, %v4240_v20  ;;  %v4243_v23 = vadd.f32 %v4973_v27, %v4202_v17 }
 0x4f8   :  { %5809 = vpow2.f32 %v4878_v22  ;;  %v4885_v24 = vmul.f32 -1.442695, %v4243_v23 }
 0x4fa   :  { %5811 = vpow2.f32 %v4885_v24 }
 0x502   :  { %v5810_v25 = vpop.eup %5809 }
 0x503   :  { %v4294_v30 = vadd.f32 1.0, %v5810_v25 }
 0x504   :  { %v5812_v31 = vpop.eup %5811 }
 0x505   :  { %5813 = vrcp.f32 %v4294_v30  ;;  %v4301_v32 = vadd.f32 1.0, %v5812_v31 }
 0x507   :  { %5815 = vrcp.f32 %v4301_v32 }
 0x50f   :  { %v5814_v19 = vpop.eup %5813 }
 0x510   :  { %4336 = vst [vmem:[%s7610_s9 + $0x30] sm:$0xff] %v5814_v19 }
 0x511   :  { %v5816_v33 = vpop.eup %5815 }
 0x512   :  { %4343 = vst [vmem:[%s7610_s9 + $0x68] sm:$0xff] %v5816_v33 }
 0x52f   :  { %v4155_v21 = vpop.f32.mrb[16].mxu0 }
 0x530   :  { %v4994_v37 = vadd.f32 %v4155_v21, %v2738_v35  ;;  %v4157_v38 = vpop.f32.mrb[17].mxu0 }
 0x531   :  { %v4995_v43 = vadd.f32 %v4157_v38, %v2742_v36  ;;  %v4159_v39 = vpop.f32.mrb[18].mxu0 }
 0x532   :  { %v4876_v40 = vmul.f32 -1.442695, %v4994_v37  ;;  %v4996_v41 = vadd.f32 %v4159_v39, %v2738_v35  ;;  %v4161_v44 = vpop.f32.mrb[19].mxu0 }
 0x533   :  { %v4877_v45 = vmul.f32 -1.442695, %v4995_v43  ;;  %v4997_v46 = vadd.f32 %v4161_v44, %v2742_v36 }
 0x534   :  { %5817 = vpow2.f32 %v4876_v40  ;;  %v4883_v47 = vmul.f32 -1.442695, %v4996_v41 }
 0x535   :  { %5819 = vpow2.f32 %v4877_v45  ;;  %v4884_v48 = vmul.f32 -1.442695, %v4997_v46 }
 0x536   :  { %5821 = vpow2.f32 %v4883_v47 }
 0x537   :  { %5823 = vpow2.f32 %v4884_v48 }
 0x53e   :  { %v5818_v18 = vpop.eup %5817 }
 0x53f   :  { %v5820_v49 = vpop.eup %5819  ;;  %v4292_v28 = vadd.f32 1.0, %v5818_v18 }
 0x540   :  { %v5822_v12 = vpop.eup %5821  ;;  %v4293_v50 = vadd.f32 1.0, %v5820_v49 }
 0x541   :  { %v5824_v51 = vpop.eup %5823  ;;  %5825 = vrcp.f32 %v4292_v28  ;;  %v4299_v26 = vadd.f32 1.0, %v5822_v12 }
 0x542   :  { %5827 = vrcp.f32 %v4293_v50  ;;  %v4300_v29 = vadd.f32 1.0, %v5824_v51 }
 0x543   :  { %5829 = vrcp.f32 %v4299_v26 }
 0x544   :  { %5831 = vrcp.f32 %v4300_v29 }
 0x54b   :  { %v5826_v52 = vpop.eup %5825 }
 0x54c   :  { %v5828_v53 = vpop.eup %5827  ;;  %4334 = vst [vmem:[%s7610_s9 + $0x20] sm:$0xff] %v5826_v52 }
 0x54d   :  { %v5830_v54 = vpop.eup %5829  ;;  %4335 = vst [vmem:[%s7610_s9 + $0x28] sm:$0xff] %v5828_v53 }
 0x54e   :  { %v5832_v55 = vpop.eup %5831  ;;  %4341 = vst [vmem:[%s7610_s9 + $0x58] sm:$0xff] %v5830_v54 }
 0x54f   :  { %4342 = vst [vmem:[%s7610_s9 + $0x60] sm:$0xff] %v5832_v55 }

</bundles_post_ra>
